<compile_context>
chip_gen: v5e
topology: v5e:2x2
jax: 0.10.0
libtpu: 0.0.40
codegen_flags: <defaults>
</compile_context>

<pallas_src>
import functools

import jax
import jax.numpy as jnp
from jax.experimental import pallas as pl
from jax.experimental.pallas import tpu as pltpu

_NEG_INF = -1e30


def _mlp_kernel(x_ref, w1_ref, b1_ref, w2_ref, b2_ref, w3_ref, b3_ref, o_ref):
    # fc1 (+ folded BN1 + bias) + relu.  bf16 MXU inputs, f32 accumulation.
    h1 = jnp.dot(x_ref[...], w1_ref[...], preferred_element_type=jnp.float32)
    h1 = jnp.maximum(h1 + b1_ref[...], 0.0)
    # dropout(p=0.5, training=False) -> identity

    # fc2 (+ folded BN2 + bias) + relu
    h2 = jnp.dot(h1.astype(w2_ref.dtype), w2_ref[...],
                 preferred_element_type=jnp.float32)
    h2 = jnp.maximum(h2 + b2_ref[...], 0.0)
    # dropout(p=0.2, training=False) -> identity

    # fc3 + log_softmax over classes.  Padded class columns carry a -1e30
    # f32 bias so exp() underflows to 0 and they never affect the softmax.
    logits = jnp.dot(h2.astype(w3_ref.dtype), w3_ref[...],
                     preferred_element_type=jnp.float32) + b3_ref[...]
    m = jnp.max(logits, axis=-1, keepdims=True)
    z = logits - m
    lse = jnp.log(jnp.sum(jnp.exp(z), axis=-1, keepdims=True))
    o_ref[...] = (z - lse).astype(o_ref.dtype)


def _round_up(x, m):
    return (x + m - 1) // m * m


@functools.partial(jax.jit, static_argnames=("n_input", "n_class"))
def mlpnet_forward(x_nchw, params, *, n_input, n_class):
    """x_nchw: (B, depth, height, width) float32."""
    B = x_nchw.shape[0]
    x = x_nchw.reshape(B, n_input).astype(jnp.bfloat16)

    # ---- Fold eval-mode BatchNorm1d + linear bias into weight/bias (trace-time, free).
    def fold(w, b, gamma, beta, mean, var, eps=1e-5):
        scale = gamma / jnp.sqrt(var + eps)          # (F,)
        w_f = w * scale[None, :]
        b_f = b * scale + (beta - mean * scale)
        return w_f, b_f

    w1f, b1f = fold(params["w1"], params["b1"], params["bn1_g"], params["bn1_b"],
                    params["bn1_m"], params["bn1_v"])
    w2f, b2f = fold(params["w2"], params["b2"], params["bn2_g"], params["bn2_b"],
                    params["bn2_m"], params["bn2_v"])
    w3, b3 = params["w3"], params["b3"]

    # ---- Pad feature dims to lane-aligned sizes (500->512, 250->256, n_class->128).
    h1_dim, h2_dim = w1f.shape[1], w2f.shape[1]
    H1 = _round_up(h1_dim, 128)
    H2 = _round_up(h2_dim, 128)
    NC = _round_up(n_class, 128)

    w1p = jnp.pad(w1f, ((0, 0), (0, H1 - h1_dim)))
    b1p = jnp.pad(b1f, (0, H1 - h1_dim))
    w2p = jnp.pad(w2f, ((0, H1 - h1_dim), (0, H2 - h2_dim)))
    b2p = jnp.pad(b2f, (0, H2 - h2_dim))
    w3p = jnp.pad(w3, ((0, H2 - h2_dim), (0, NC - n_class)))
    b3p = jnp.pad(b3, (0, NC - n_class), constant_values=_NEG_INF)

    # ---- Batch tiling: grid over batch, weights resident across iterations.
    # TB=512 (1024 for very large B) so per-step MXU work (~0.8+ us) dwarfs
    # the fixed ~0.35 us grid-step overhead; floor of 16 rows for bf16 sublane
    # packing at tiny batch.
    if B >= 8192:
        TB = 1024
    else:
        TB = min(512, max(16, _round_up(B, 16)))
    Bp = _round_up(B, TB)
    if Bp != B:
        x = jnp.pad(x, ((0, Bp - B), (0, 0)))
    num_steps = Bp // TB

    # Megacore split (v7x: 2 TCs) only pays once each core has enough grid
    # steps to amortize its private copy of the resident weights.
    dim_sem = ("parallel",) if num_steps >= 8 else ("arbitrary",)

    operands = (
        x,
        w1p.astype(jnp.bfloat16), b1p[None, :].astype(jnp.float32),
        w2p.astype(jnp.bfloat16), b2p[None, :].astype(jnp.float32),
        w3p.astype(jnp.bfloat16), b3p[None, :].astype(jnp.float32),
    )

    def resident(shape):
        # Constant index_map -> block is DMA'd once and stays VMEM-resident
        # across the whole batch grid.
        return pl.BlockSpec(shape, lambda i: (0, 0))

    out = pl.pallas_call(
        _mlp_kernel,
        out_shape=jax.ShapeDtypeStruct((Bp, NC), jnp.float32),
        grid=(num_steps,),
        in_specs=[
            pl.BlockSpec((TB, n_input), lambda i: (i, 0)),   # x tile, pipelined
            resident((n_input, H1)), resident((1, H1)),
            resident((H1, H2)), resident((1, H2)),
            resident((H2, NC)), resident((1, NC)),
        ],
        out_specs=pl.BlockSpec((TB, NC), lambda i: (i, 0)),
        compiler_params=pltpu.CompilerParams(
            dimension_semantics=dim_sem,
            vmem_limit_bytes=32 << 20,
        ),
    )(*operands)

    return out[:B, :n_class]


def init_params(key, n_input, n_class, h1=500, h2=250):
    """Deterministic init mirroring nn.Linear default (U[-1/sqrt(fan_in), +])."""
    ks = jax.random.split(key, 6)

    def linear(kw, kb, fan_in, fan_out):
        bound = 1.0 / jnp.sqrt(float(fan_in))
        w = jax.random.uniform(kw, (fan_in, fan_out), jnp.float32, -bound, bound)
        b = jax.random.uniform(kb, (fan_out,), jnp.float32, -bound, bound)
        return w, b

    w1, b1 = linear(ks[0], ks[1], n_input, h1)
    w2, b2 = linear(ks[2], ks[3], h1, h2)
    w3, b3 = linear(ks[4], ks[5], h2, n_class)

    # BatchNorm1d defaults: gamma=1, beta=0, running_mean=0, running_var=1.
    return dict(
        w1=w1, b1=b1,
        bn1_g=jnp.ones((h1,), jnp.float32), bn1_b=jnp.zeros((h1,), jnp.float32),
        bn1_m=jnp.zeros((h1,), jnp.float32), bn1_v=jnp.ones((h1,), jnp.float32),
        w2=w2, b2=b2,
        bn2_g=jnp.ones((h2,), jnp.float32), bn2_b=jnp.zeros((h2,), jnp.float32),
        bn2_m=jnp.zeros((h2,), jnp.float32), bn2_v=jnp.ones((h2,), jnp.float32),
        w3=w3, b3=b3,
    )


def reference_forward(x_nchw, params, n_input):
    """Pure-JAX f32 reference (eval-mode BN, dropout = identity)."""
    x = x_nchw.reshape(x_nchw.shape[0], n_input)

    def bn(h, g, b, m, v, eps=1e-5):
        return (h - m) / jnp.sqrt(v + eps) * g + b

    h = jnp.maximum(bn(x @ params["w1"] + params["b1"],
                       params["bn1_g"], params["bn1_b"],
                       params["bn1_m"], params["bn1_v"]), 0.0)
    h = jnp.maximum(bn(h @ params["w2"] + params["b2"],
                       params["bn2_g"], params["bn2_b"],
                       params["bn2_m"], params["bn2_v"]), 0.0)
    logits = h @ params["w3"] + params["b3"]
    return jax.nn.log_softmax(logits, axis=-1)


if __name__ == "__main__":
    width, height, depth, n_class = 16, 16, 4, 10
    n_input = width * height * depth  # 1024

    key = jax.random.PRNGKey(0)
    k_x, k_p = jax.random.split(key)
    params = init_params(k_p, n_input, n_class)

    # --- Small-batch check (single grid step, TB floor 16), strict tolerance.
    batch = 2
    x = jax.random.normal(k_x, (batch, depth, height, width), jnp.float32)
    out = mlpnet_forward(x, params, n_input=n_input, n_class=n_class)
    out = jax.block_until_ready(out)

    ref = reference_forward(x, params, n_input)
    assert out.shape == (batch, n_class)
    # bf16 matmul inputs vs f32 reference -> loose tolerance.
    assert jnp.allclose(out, ref, atol=3e-2, rtol=3e-2)
    # log_softmax rows must sum to 1 in probability space.
    assert jnp.allclose(jnp.exp(out).sum(-1), 1.0, atol=1e-3)

    # --- Large-batch check: exercises TB=512, batch padding (4100 -> 4608),
    # multi-step grid (9 steps) and the "parallel" megacore path.
    big = 4100
    xb = jax.random.normal(jax.random.PRNGKey(1),
                           (big, depth, height, width), jnp.float32)
    outb = mlpnet_forward(xb, params, n_input=n_input, n_class=n_class)
    outb = jax.block_until_ready(outb)

    refb = reference_forward(xb, params, n_input)
    assert outb.shape == (big, n_class)
    assert bool(jnp.all(jnp.isfinite(outb)))
    assert jnp.allclose(jnp.exp(outb).sum(-1), 1.0, atol=1e-3)
    assert float(jnp.max(jnp.abs(outb - refb))) < 1e-1

    print("KERNEL_OK")
</pallas_src>

<mosaic_0001>
module attributes {stable_mosaic.version = 11 : i64} {
  func.func @_mlp_kernel(%arg0: i32, %arg1: memref<16x1024xbf16, #tpu.memory_space<vmem>>, %arg2: memref<1024x512xbf16, #tpu.memory_space<vmem>>, %arg3: memref<1x512xf32, #tpu.memory_space<vmem>>, %arg4: memref<512x256xbf16, #tpu.memory_space<vmem>>, %arg5: memref<1x256xf32, #tpu.memory_space<vmem>>, %arg6: memref<256x128xbf16, #tpu.memory_space<vmem>>, %arg7: memref<1x128xf32, #tpu.memory_space<vmem>>, %arg8: memref<16x128xf32, #tpu.memory_space<vmem>>) attributes {dimension_semantics = [#tpu.dimension_semantics<arbitrary>], iteration_bounds = array<i64: 1>, scalar_prefetch = 0 : i64, scratch_operands = 0 : i64, tpu.core_type = #tpu.core_type<tc>, window_params = [{transform_indices = @transform_0, window_bounds = array<i64: 16, 1024>}, {pipeline_mode = #tpu.pipeline_mode<synchronous>, transform_indices = @transform_1, window_bounds = array<i64: 1024, 512>}, {pipeline_mode = #tpu.pipeline_mode<synchronous>, transform_indices = @transform_2, window_bounds = array<i64: 1, 512>}, {pipeline_mode = #tpu.pipeline_mode<synchronous>, transform_indices = @transform_3, window_bounds = array<i64: 512, 256>}, {pipeline_mode = #tpu.pipeline_mode<synchronous>, transform_indices = @transform_4, window_bounds = array<i64: 1, 256>}, {pipeline_mode = #tpu.pipeline_mode<synchronous>, transform_indices = @transform_5, window_bounds = array<i64: 256, 128>}, {pipeline_mode = #tpu.pipeline_mode<synchronous>, transform_indices = @transform_6, window_bounds = array<i64: 1, 128>}, {transform_indices = @transform_7, window_bounds = array<i64: 16, 128>}]} {
    %c0 = arith.constant 0 : index
    %c0_0 = arith.constant 0 : index
    %0 = vector.load %arg1[%c0, %c0_0] : memref<16x1024xbf16, #tpu.memory_space<vmem>>, vector<16x1024xbf16>
    %c0_1 = arith.constant 0 : index
    %c0_2 = arith.constant 0 : index
    %1 = vector.load %arg2[%c0_1, %c0_2] : memref<1024x512xbf16, #tpu.memory_space<vmem>>, vector<1024x512xbf16>
    %cst = arith.constant dense<0.000000e+00> : vector<16x512xf32>
    %2 = tpu.matmul %0, %1, %cst {dimension_numbers = #tpu.dot_dimension_numbers<[1], [0], [0], [1], [0, 0, 1, 1], [], []>} : vector<16x1024xbf16>, vector<1024x512xbf16>, vector<16x512xf32> -> vector<16x512xf32>
    %c0_3 = arith.constant 0 : index
    %c0_4 = arith.constant 0 : index
    %3 = vector.load %arg3[%c0_3, %c0_4] : memref<1x512xf32, #tpu.memory_space<vmem>>, vector<1x512xf32>
    %4 = vector.broadcast %3 : vector<1x512xf32> to vector<16x512xf32>
    %5 = arith.addf %2, %4 : vector<16x512xf32>
    %cst_5 = arith.constant 0.000000e+00 : f32
    %6 = vector.broadcast %cst_5 : f32 to vector<16x512xf32>
    %7 = arith.maximumf %5, %6 : vector<16x512xf32>
    %8 = arith.truncf %7 : vector<16x512xf32> to vector<16x512xbf16>
    %c0_6 = arith.constant 0 : index
    %c0_7 = arith.constant 0 : index
    %9 = vector.load %arg4[%c0_6, %c0_7] : memref<512x256xbf16, #tpu.memory_space<vmem>>, vector<512x256xbf16>
    %cst_8 = arith.constant dense<0.000000e+00> : vector<16x256xf32>
    %10 = tpu.matmul %8, %9, %cst_8 {dimension_numbers = #tpu.dot_dimension_numbers<[1], [0], [0], [1], [0, 0, 1, 1], [], []>} : vector<16x512xbf16>, vector<512x256xbf16>, vector<16x256xf32> -> vector<16x256xf32>
    %c0_9 = arith.constant 0 : index
    %c0_10 = arith.constant 0 : index
    %11 = vector.load %arg5[%c0_9, %c0_10] : memref<1x256xf32, #tpu.memory_space<vmem>>, vector<1x256xf32>
    %12 = vector.broadcast %11 : vector<1x256xf32> to vector<16x256xf32>
    %13 = arith.addf %10, %12 : vector<16x256xf32>
    %cst_11 = arith.constant 0.000000e+00 : f32
    %14 = vector.broadcast %cst_11 : f32 to vector<16x256xf32>
    %15 = arith.maximumf %13, %14 : vector<16x256xf32>
    %16 = arith.truncf %15 : vector<16x256xf32> to vector<16x256xbf16>
    %c0_12 = arith.constant 0 : index
    %c0_13 = arith.constant 0 : index
    %17 = vector.load %arg6[%c0_12, %c0_13] : memref<256x128xbf16, #tpu.memory_space<vmem>>, vector<256x128xbf16>
    %cst_14 = arith.constant dense<0.000000e+00> : vector<16x128xf32>
    %18 = tpu.matmul %16, %17, %cst_14 {dimension_numbers = #tpu.dot_dimension_numbers<[1], [0], [0], [1], [0, 0, 1, 1], [], []>} : vector<16x256xbf16>, vector<256x128xbf16>, vector<16x128xf32> -> vector<16x128xf32>
    %c0_15 = arith.constant 0 : index
    %c0_16 = arith.constant 0 : index
    %19 = vector.load %arg7[%c0_15, %c0_16] : memref<1x128xf32, #tpu.memory_space<vmem>>, vector<1x128xf32>
    %20 = vector.broadcast %19 : vector<1x128xf32> to vector<16x128xf32>
    %21 = arith.addf %18, %20 : vector<16x128xf32>
    %cst_17 = arith.constant dense<0xFF800000> : vector<16xf32>
    %22 = vector.multi_reduction <maximumf>, %21, %cst_17 [1] : vector<16x128xf32> to vector<16xf32>
    %23 = vector.shape_cast %22 : vector<16xf32> to vector<16x1xf32>
    %24 = vector.broadcast %23 : vector<16x1xf32> to vector<16x128xf32>
    %25 = arith.subf %21, %24 : vector<16x128xf32>
    %26 = math.exp %25 : vector<16x128xf32>
    %cst_18 = arith.constant dense<0.000000e+00> : vector<16xf32>
    %27 = vector.multi_reduction <add>, %26, %cst_18 [1] : vector<16x128xf32> to vector<16xf32>
    %28 = vector.shape_cast %27 : vector<16xf32> to vector<16x1xf32>
    %29 = math.log %28 : vector<16x1xf32>
    %30 = vector.broadcast %29 : vector<16x1xf32> to vector<16x128xf32>
    %31 = arith.subf %25, %30 : vector<16x128xf32>
    %c0_19 = arith.constant 0 : index
    %c0_20 = arith.constant 0 : index
    %32 = vector.load %arg8[%c0_19, %c0_20] : memref<16x128xf32, #tpu.memory_space<vmem>>, vector<16x128xf32>
    tpu.vector_store %arg8[%c0_19, %c0_20], %31 {strides = array<i32>} : memref<16x128xf32, #tpu.memory_space<vmem>>, vector<16x128xf32>,
    return
  }
  func.func @transform_0(%arg0: i32) -> (i32, i32) {
    %c0_i32 = arith.constant 0 : i32
    %c0_i32_0 = arith.constant 0 : i32
    return %arg0, %c0_i32 : i32, i32
  }
  func.func @transform_1(%arg0: i32) -> (i32, i32) {
    %c0_i32 = arith.constant 0 : i32
    %c0_i32_0 = arith.constant 0 : i32
    %c0_i32_1 = arith.constant 0 : i32
    return %c0_i32, %c0_i32_0 : i32, i32
  }
  func.func @transform_2(%arg0: i32) -> (i32, i32) {
    %c0_i32 = arith.constant 0 : i32
    %c0_i32_0 = arith.constant 0 : i32
    %c0_i32_1 = arith.constant 0 : i32
    return %c0_i32, %c0_i32_0 : i32, i32
  }
  func.func @transform_3(%arg0: i32) -> (i32, i32) {
    %c0_i32 = arith.constant 0 : i32
    %c0_i32_0 = arith.constant 0 : i32
    %c0_i32_1 = arith.constant 0 : i32
    return %c0_i32, %c0_i32_0 : i32, i32
  }
  func.func @transform_4(%arg0: i32) -> (i32, i32) {
    %c0_i32 = arith.constant 0 : i32
    %c0_i32_0 = arith.constant 0 : i32
    %c0_i32_1 = arith.constant 0 : i32
    return %c0_i32, %c0_i32_0 : i32, i32
  }
  func.func @transform_5(%arg0: i32) -> (i32, i32) {
    %c0_i32 = arith.constant 0 : i32
    %c0_i32_0 = arith.constant 0 : i32
    %c0_i32_1 = arith.constant 0 : i32
    return %c0_i32, %c0_i32_0 : i32, i32
  }
  func.func @transform_6(%arg0: i32) -> (i32, i32) {
    %c0_i32 = arith.constant 0 : i32
    %c0_i32_0 = arith.constant 0 : i32
    %c0_i32_1 = arith.constant 0 : i32
    return %c0_i32, %c0_i32_0 : i32, i32
  }
  func.func @transform_7(%arg0: i32) -> (i32, i32) {
    %c0_i32 = arith.constant 0 : i32
    %c0_i32_0 = arith.constant 0 : i32
    return %arg0, %c0_i32 : i32, i32
  }
}

</mosaic_0001>

<bundles_post_ra>
// kernel: mlpnet_forward.1
= control target key start
LH: loop header
LB: loop body
LE: loop exit
PB: predicated region body
PF: predicated region fallthrough
CT: control target
= control target key end

     0   :  { %s6684_s1 = inlined_call_operand.vmem [shape: bf16[1024,512], index: 1, kind: input, shape index: {}]   ;;  %s6685_s0 = inlined_call_operand.vmem [shape: bf16[16,1024], index: 0, kind: input, shape index: {}]   ;;  %s6686_s2 = inlined_call_operand.vmem [shape: f32[1,512], index: 2, kind: input, shape index: {}]   ;;  %s6687_s3 = inlined_call_operand.vmem [shape: bf16[512,256], index: 3, kind: input, shape index: {}]   ;;  %s6688_s6 = inlined_call_operand.vmem [shape: f32[1,128], index: 6, kind: input, shape index: {}]   ;;  %s6689_s5 = inlined_call_operand.vmem [shape: bf16[256,128], index: 5, kind: input, shape index: {}]   ;;  %s6690_s4 = inlined_call_operand.vmem [shape: f32[1,256], index: 4, kind: input, shape index: {}]   ;;  %s6691_s7 = inlined_call_operand.vmem [shape: f32[16,128], index: 7, kind: output, shape index: {}]  }
   0x1   :  { %v2920_v0 = vld [vmem:[%s6684_s1 + $0xe0] sm:$0xf]  ;;  %v4188_v1 = vld [vmem:[%s6684_s1 + $0xec] sm:$0xf0] }
   0x2   :  { %v3048_v2 = vld [vmem:[%s6684_s1 + $0x1e0] sm:$0xf]  ;;  %v2921_v3 = vor.u32 %v4188_v1, %v2920_v0  ;;  %v4220_v4 = vld [vmem:[%s6684_s1 + $0x1ec] sm:$0xf0] }
   0x3   :  { %v3176_v5 = vld [vmem:[%s6684_s1 + $0x2e0] sm:$0xf]  ;;  %v4252_v6 = vld [vmem:[%s6684_s1 + $0x2ec] sm:$0xf0]  ;;  %v3049_v7 = vor.u32 %v4220_v4, %v3048_v2 }
   0x4   :  { %v3177_v8 = vor.u32 %v4252_v6, %v3176_v5  ;;  %v3304_v9 = vld [vmem:[%s6684_s1 + $0x3e0] sm:$0xf]  ;;  %v4284_v10 = vld [vmem:[%s6684_s1 + $0x3ec] sm:$0xf0]  ;;  %1620 = vmatpush.bf16.msra.mxu0 %v2921_v3 }
   0x5   :  { %v2904_v11 = vld [vmem:[%s6684_s1 + $0xc0] sm:$0xf]  ;;  %v3305_v12 = vor.u32 %v4284_v10, %v3304_v9  ;;  %v4184_v13 = vld [vmem:[%s6684_s1 + $0xcc] sm:$0xf0]  ;;  %1634 = vmatpush.bf16.msra.mxu1 %v3049_v7 }
   0x6   :  { %v3032_v14 = vld [vmem:[%s6684_s1 + $0x1c0] sm:$0xf]  ;;  %v4216_v15 = vld [vmem:[%s6684_s1 + $0x1cc] sm:$0xf0]  ;;  %1648 = vmatpush.bf16.msra.mxu2 %v3177_v8  ;;  %v2905_v16 = vor.u32 %v4184_v13, %v2904_v11 }
   0x7   :  { %v3033_v17 = vor.u32 %v4216_v15, %v3032_v14  ;;  %v3160_v18 = vld [vmem:[%s6684_s1 + $0x2c0] sm:$0xf]  ;;  %v4248_v19 = vld [vmem:[%s6684_s1 + $0x2cc] sm:$0xf0]  ;;  %1662 = vmatpush.bf16.msra.mxu3 %v3305_v12 }
   0x8   :  { %v3288_v20 = vld [vmem:[%s6684_s1 + $0x3c0] sm:$0xf]  ;;  %v3161_v21 = vor.u32 %v4248_v19, %v3160_v18  ;;  %v4280_v22 = vld [vmem:[%s6684_s1 + $0x3cc] sm:$0xf0]  ;;  %1621 = vmatpush.bf16.msra.mxu0 %v2905_v16 }
   0x9   :  { %v2888_v23 = vld [vmem:[%s6684_s1 + $0xa0] sm:$0xf]  ;;  %v4180_v24 = vld [vmem:[%s6684_s1 + $0xac] sm:$0xf0]  ;;  %v3289_v25 = vor.u32 %v4280_v22, %v3288_v20  ;;  %1635 = vmatpush.bf16.msra.mxu1 %v3033_v17 }
   0xa   :  { %v3016_v26 = vld [vmem:[%s6684_s1 + $0x1a0] sm:$0xf]  ;;  %v4212_v27 = vld [vmem:[%s6684_s1 + $0x1ac] sm:$0xf0]  ;;  %v2889_v29 = vor.u32 %v4180_v24, %v2888_v23  ;;  %1649 = vmatpush.bf16.msra.mxu2 %v3161_v21 }
   0xb   :  { %v3144_v28 = vld [vmem:[%s6684_s1 + $0x2a0] sm:$0xf]  ;;  %v4244_v30 = vld [vmem:[%s6684_s1 + $0x2ac] sm:$0xf0]  ;;  %v3017_v33 = vor.u32 %v4212_v27, %v3016_v26  ;;  %1663 = vmatpush.bf16.msra.mxu3 %v3289_v25 }
   0xc   :  { %v3272_v31 = vld [vmem:[%s6684_s1 + $0x3a0] sm:$0xf]  ;;  %v4276_v32 = vld [vmem:[%s6684_s1 + $0x3ac] sm:$0xf0]  ;;  %v3145_v34 = vor.u32 %v4244_v30, %v3144_v28  ;;  %1622 = vmatpush.bf16.msra.mxu0 %v2889_v29 }
   0xd   :  { %v2872_v35 = vld [vmem:[%s6684_s1 + $0x80] sm:$0xf]  ;;  %v4176_v36 = vld [vmem:[%s6684_s1 + $0x8c] sm:$0xf0]  ;;  %v3273_v38 = vor.u32 %v4276_v32, %v3272_v31  ;;  %1636 = vmatpush.bf16.msra.mxu1 %v3017_v33 }
   0xe   :  { %v3000_v37 = vld [vmem:[%s6684_s1 + $0x180] sm:$0xf]  ;;  %v4208_v39 = vld [vmem:[%s6684_s1 + $0x18c] sm:$0xf0]  ;;  %v2873_v44 = vor.u32 %v4176_v36, %v2872_v35  ;;  %1650 = vmatpush.bf16.msra.mxu2 %v3145_v34 }
   0xf   :  { %v3128_v40 = vld [vmem:[%s6684_s1 + $0x280] sm:$0xf]  ;;  %v4240_v41 = vld [vmem:[%s6684_s1 + $0x28c] sm:$0xf0]  ;;  %v3001_v45 = vor.u32 %v4208_v39, %v3000_v37  ;;  %1664 = vmatpush.bf16.msra.mxu3 %v3273_v38 }
  0x10   :  { %v3256_v42 = vld [vmem:[%s6684_s1 + $0x380] sm:$0xf]  ;;  %v4272_v43 = vld [vmem:[%s6684_s1 + $0x38c] sm:$0xf0]  ;;  %v3129_v46 = vor.u32 %v4240_v41, %v3128_v40  ;;  %1623 = vmatpush.bf16.msra.mxu0 %v2873_v44 }
  0x11   :  { %v2856_v47 = vld [vmem:[%s6684_s1 + $0x60] sm:$0xf]  ;;  %v4172_v48 = vld [vmem:[%s6684_s1 + $0x6c] sm:$0xf0]  ;;  %v3257_v50 = vor.u32 %v4272_v43, %v3256_v42  ;;  %1637 = vmatpush.bf16.msra.mxu1 %v3001_v45 }
  0x12   :  { %v2984_v49 = vld [vmem:[%s6684_s1 + $0x160] sm:$0xf]  ;;  %v4204_v51 = vld [vmem:[%s6684_s1 + $0x16c] sm:$0xf0]  ;;  %v2857_v56 = vor.u32 %v4172_v48, %v2856_v47  ;;  %1651 = vmatpush.bf16.msra.mxu2 %v3129_v46 }
  0x13   :  { %v3112_v52 = vld [vmem:[%s6684_s1 + $0x260] sm:$0xf]  ;;  %v4236_v53 = vld [vmem:[%s6684_s1 + $0x26c] sm:$0xf0]  ;;  %v2985_v57 = vor.u32 %v4204_v51, %v2984_v49  ;;  %1665 = vmatpush.bf16.msra.mxu3 %v3257_v50 }
  0x14   :  { %v3240_v54 = vld [vmem:[%s6684_s1 + $0x360] sm:$0xf]  ;;  %v4268_v55 = vld [vmem:[%s6684_s1 + $0x36c] sm:$0xf0]  ;;  %v3113_v58 = vor.u32 %v4236_v53, %v3112_v52  ;;  %1624 = vmatpush.bf16.msra.mxu0 %v2857_v56 }
  0x15   :  { %v2840_v59 = vld [vmem:[%s6684_s1 + $0x40] sm:$0xf]  ;;  %v4168_v60 = vld [vmem:[%s6684_s1 + $0x4c] sm:$0xf0]  ;;  %v3241_v62 = vor.u32 %v4268_v55, %v3240_v54  ;;  %1638 = vmatpush.bf16.msra.mxu1 %v2985_v57  ;;  %v2784_v54 = vld [vmem:[%s6685_s0 + $0x8] sm:$0xf] }
  0x16   :  { %v2968_v61 = vld [vmem:[%s6684_s1 + $0x140] sm:$0xf]  ;;  %v4200_v63 = vld [vmem:[%s6684_s1 + $0x14c] sm:$0xf0]  ;;  %v2841_v4 = vor.u32 %v4168_v60, %v2840_v59  ;;  %1652 = vmatpush.bf16.msra.mxu2 %v3113_v58  ;;  %v4155_v59 = vld [vmem:[%s6685_s0 + $0x24] sm:$0xf0] }
  0x17   :  { %v3096_v0 = vld [vmem:[%s6684_s1 + $0x240] sm:$0xf]  ;;  %v4232_v1 = vld [vmem:[%s6684_s1 + $0x24c] sm:$0xf0]  ;;  %v2969_v5 = vor.u32 %v4200_v63, %v2968_v61  ;;  %1666 = vmatpush.bf16.msra.mxu3 %v3241_v62 }
  0x18   :  { %v3224_v2 = vld [vmem:[%s6684_s1 + $0x340] sm:$0xf]  ;;  %v4264_v3 = vld [vmem:[%s6684_s1 + $0x34c] sm:$0xf0]  ;;  %v3097_v6 = vor.u32 %v4232_v1, %v3096_v0  ;;  %1625 = vmatpush.bf16.msra.mxu0 %v2841_v4  ;;  %v4812_v1 = vor.u32 %v4155_v59, %v2784_v54 }
  0x19   :  { %v2824_v7 = vld [vmem:[%s6684_s1 + $0x20] sm:$0xf]  ;;  %v4164_v8 = vld [vmem:[%s6684_s1 + $0x2c] sm:$0xf0]  ;;  %v3225_v10 = vor.u32 %v4264_v3, %v3224_v2  ;;  %1639 = vmatpush.bf16.msra.mxu1 %v2969_v5 }
  0x1a   :  { %v2952_v9 = vld [vmem:[%s6684_s1 + $0x120] sm:$0xf]  ;;  %v4196_v11 = vld [vmem:[%s6684_s1 + $0x12c] sm:$0xf0]  ;;  %v2825_v16 = vor.u32 %v4164_v8, %v2824_v7  ;;  %1653 = vmatpush.bf16.msra.mxu2 %v3097_v6  ;;  %v4150_v6 = vld [vmem:[%s6685_s0 + $0x4] sm:$0xf] }
  0x1b   :  { %v3080_v12 = vld [vmem:[%s6684_s1 + $0x220] sm:$0xf]  ;;  %v4228_v13 = vld [vmem:[%s6684_s1 + $0x22c] sm:$0xf0]  ;;  %v2953_v19 = vor.u32 %v4196_v11, %v2952_v9  ;;  %1667 = vmatpush.bf16.msra.mxu3 %v3225_v10  ;;  %v2778_v7 = vld [vmem:[%s6685_s0 + $0x20] sm:$0xf0] }
  0x1c   :  { %v3208_v14 = vld [vmem:[%s6684_s1 + $0x320] sm:$0xf]  ;;  %v4260_v15 = vld [vmem:[%s6684_s1 + $0x32c] sm:$0xf0]  ;;  %v3081_v20 = vor.u32 %v4228_v13, %v3080_v12  ;;  %1626 = vmatpush.bf16.msra.mxu0 %v2825_v16  ;;  %v4151_v8 = vld [vmem:[%s6685_s0 + $0xc] sm:$0xf]  ;;  %v4834_v10 = vor.u32 %v4150_v6, %v2778_v7 }
  0x1d   :  { %v2808_v17 = vld [vmem:[%s6684_s1] sm:$0xf]  ;;  %v4160_v18 = vld [vmem:[%s6684_s1 + $0xc] sm:$0xf0]  ;;  %v3209_v24 = vor.u32 %v4260_v15, %v3208_v14  ;;  %1640 = vmatpush.bf16.msra.mxu1 %v2953_v19  ;;  %v2786_v11 = vld [vmem:[%s6685_s0 + $0x28] sm:$0xf0] }
  0x1e   :  { %v2936_v21 = vld [vmem:[%s6684_s1 + $0x100] sm:$0xf]  ;;  %v4192_v22 = vld [vmem:[%s6684_s1 + $0x10c] sm:$0xf0]  ;;  %v2809_v31 = vor.u32 %v4160_v18, %v2808_v17  ;;  %1654 = vmatpush.bf16.msra.mxu2 %v3081_v20  ;;  %v4848_v17 = vor.u32 %v4151_v8, %v2786_v11 }
  0x1f   :  { %v3064_v23 = vld [vmem:[%s6684_s1 + $0x200] sm:$0xf]  ;;  %v4224_v25 = vld [vmem:[%s6684_s1 + $0x20c] sm:$0xf0]  ;;  %v2937_v35 = vor.u32 %v4192_v22, %v2936_v21  ;;  %1668 = vmatpush.bf16.msra.mxu3 %v3209_v24 }
  0x20   :  { %v3192_v26 = vld [vmem:[%s6684_s1 + $0x300] sm:$0xf]  ;;  %v4256_v27 = vld [vmem:[%s6684_s1 + $0x30c] sm:$0xf0]  ;;  %v3065_v36 = vor.u32 %v4224_v25, %v3064_v23  ;;  %1627 = vmatpush.bf16.msra.mxu0 %v2809_v31 }
  0x21   :  { %v3432_v28 = vld [vmem:[%s6684_s1 + $0x4e0] sm:$0xf]  ;;  %v4316_v29 = vld [vmem:[%s6684_s1 + $0x4ec] sm:$0xf0]  ;;  %v3193_v39 = vor.u32 %v4256_v27, %v3192_v26  ;;  %1641 = vmatpush.bf16.msra.mxu1 %v2937_v35 }
  0x22   :  { %v3560_v30 = vld [vmem:[%s6684_s1 + $0x5e0] sm:$0xf]  ;;  %v4348_v32 = vld [vmem:[%s6684_s1 + $0x5ec] sm:$0xf0]  ;;  %v3433_v40 = vor.u32 %v4316_v29, %v3432_v28  ;;  %1655 = vmatpush.bf16.msra.mxu2 %v3065_v36 }
  0x23   :  { %v3688_v33 = vld [vmem:[%s6684_s1 + $0x6e0] sm:$0xf]  ;;  %v4380_v34 = vld [vmem:[%s6684_s1 + $0x6ec] sm:$0xf0]  ;;  %v3561_v43 = vor.u32 %v4348_v32, %v3560_v30  ;;  %1669 = vmatpush.bf16.msra.mxu3 %v3193_v39 }
  0x24   :  { %v3816_v37 = vld [vmem:[%s6684_s1 + $0x7e0] sm:$0xf]  ;;  %v4412_v38 = vld [vmem:[%s6684_s1 + $0x7ec] sm:$0xf0]  ;;  %v3689_v44 = vor.u32 %v4380_v34, %v3688_v33  ;;  %1676 = vmatpush.bf16.msrb.mxu0 %v3433_v40  ;;  %1642 = vmatmul.bf16.vlgmr.msra.gmra.mxu1 %v4834_v10 }
  0x25   :  { %v3416_v41 = vld [vmem:[%s6684_s1 + $0x4c0] sm:$0xf]  ;;  %v4312_v42 = vld [vmem:[%s6684_s1 + $0x4cc] sm:$0xf0]  ;;  %v3817_v48 = vor.u32 %v4412_v38, %v3816_v37  ;;  %1690 = vmatpush.bf16.msrb.mxu1 %v3561_v43  ;;  %1656 = vmatmul.bf16.vlgmr.msra.gmra.mxu2 %v4812_v1 }
  0x26   :  { %v3544_v45 = vld [vmem:[%s6684_s1 + $0x5c0] sm:$0xf]  ;;  %v4344_v46 = vld [vmem:[%s6684_s1 + $0x5cc] sm:$0xf0]  ;;  %v3417_v55 = vor.u32 %v4312_v42, %v3416_v41  ;;  %1704 = vmatpush.bf16.msrb.mxu2 %v3689_v44  ;;  %1670 = vmatmul.bf16.vlgmr.msra.gmra.mxu3 %v4848_v17 }
  0x27   :  { %v3672_v47 = vld [vmem:[%s6684_s1 + $0x6c0] sm:$0xf]  ;;  %v4376_v49 = vld [vmem:[%s6684_s1 + $0x6cc] sm:$0xf0]  ;;  %v3545_v60 = vor.u32 %v4344_v46, %v3544_v45  ;;  %1718 = vmatpush.bf16.msrb.mxu3 %v3817_v48 }
  0x28   :  { %v3800_v50 = vld [vmem:[%s6684_s1 + $0x7c0] sm:$0xf]  ;;  %v4408_v51 = vld [vmem:[%s6684_s1 + $0x7cc] sm:$0xf0]  ;;  %v3673_v61 = vor.u32 %v4376_v49, %v3672_v47  ;;  %1677 = vmatpush.bf16.msrb.mxu0 %v3417_v55 }
  0x29   :  { %v2776_v52 = vld [vmem:[%s6685_s0] sm:$0xf]  ;;  %v4308_v57 = vld [vmem:[%s6684_s1 + $0x4ac] sm:$0xf0]  ;;  %v3801_v2 = vor.u32 %v4408_v51, %v3800_v50  ;;  %1691 = vmatpush.bf16.msrb.mxu1 %v3545_v60 }
  0x2a   :  { %v4154_v53 = vld [vmem:[%s6685_s0 + $0x1c] sm:$0xf0]  ;;  %v4340_v63 = vld [vmem:[%s6684_s1 + $0x5ac] sm:$0xf0]  ;;  %1705 = vmatpush.bf16.msrb.mxu2 %v3673_v61 }
  0x2b   :  { %v3400_v56 = vld [vmem:[%s6684_s1 + $0x4a0] sm:$0xf]  ;;  %v4798_v58 = vor.u32 %v4154_v53, %v2776_v52  ;;  %v4372_v3 = vld [vmem:[%s6684_s1 + $0x6ac] sm:$0xf0]  ;;  %1719 = vmatpush.bf16.msrb.mxu3 %v3801_v2 }
  0x2c   :  { %v3528_v62 = vld [vmem:[%s6684_s1 + $0x5a0] sm:$0xf]  ;;  %v4404_v5 = vld [vmem:[%s6684_s1 + $0x7ac] sm:$0xf0]  ;;  %v3401_v9 = vor.u32 %v4308_v57, %v3400_v56 }
  0x2d   :  { %v3656_v0 = vld [vmem:[%s6684_s1 + $0x6a0] sm:$0xf]  ;;  %1628 = vmatmul.bf16.vlgmr.msra.gmra.mxu0 %v4798_v58  ;;  %v3529_v12 = vor.u32 %v4340_v63, %v3528_v62  ;;  %v4304_v15 = vld [vmem:[%s6684_s1 + $0x48c] sm:$0xf0] }
  0x2e   :  { %v3784_v4 = vld [vmem:[%s6684_s1 + $0x7a0] sm:$0xf]  ;;  %v3657_v13 = vor.u32 %v4372_v3, %v3656_v0  ;;  %v4336_v19 = vld [vmem:[%s6684_s1 + $0x58c] sm:$0xf0]  ;;  %1678 = vmatpush.bf16.msrb.mxu0 %v3401_v9  ;;  %v4186_v9 = vld [vmem:[%s6684_s1 + $0xe4] sm:$0xf] }
  0x2f   :  { %v3384_v14 = vld [vmem:[%s6684_s1 + $0x480] sm:$0xf]  ;;  %v3785_v18 = vor.u32 %v4404_v5, %v3784_v4  ;;  %v4368_v21 = vld [vmem:[%s6684_s1 + $0x68c] sm:$0xf0]  ;;  %1692 = vmatpush.bf16.msrb.mxu1 %v3529_v12  ;;  %v2922_v12 = vld [vmem:[%s6684_s1 + $0xf0] sm:$0xf0] }
  0x30   :  { %v3512_v16 = vld [vmem:[%s6684_s1 + $0x580] sm:$0xf]  ;;  %v4400_v23 = vld [vmem:[%s6684_s1 + $0x78c] sm:$0xf0]  ;;  %v3385_v24 = vor.u32 %v4304_v15, %v3384_v14  ;;  %1706 = vmatpush.bf16.msrb.mxu2 %v3657_v13  ;;  %v4218_v13 = vld [vmem:[%s6684_s1 + $0x1e4] sm:$0xf] }
  0x31   :  { %v3640_v20 = vld [vmem:[%s6684_s1 + $0x680] sm:$0xf]  ;;  %v3513_v25 = vor.u32 %v4336_v19, %v3512_v16  ;;  %v4300_v28 = vld [vmem:[%s6684_s1 + $0x46c] sm:$0xf0]  ;;  %1720 = vmatpush.bf16.msrb.mxu3 %v3785_v18  ;;  %v3050_v14 = vld [vmem:[%s6684_s1 + $0x1f0] sm:$0xf0] }
  0x32   :  { %v3768_v22 = vld [vmem:[%s6684_s1 + $0x780] sm:$0xf]  ;;  %v3641_v26 = vor.u32 %v4368_v21, %v3640_v20  ;;  %v4332_v31 = vld [vmem:[%s6684_s1 + $0x56c] sm:$0xf0]  ;;  %1679 = vmatpush.bf16.msrb.mxu0 %v3385_v24  ;;  %v4250_v15 = vld [vmem:[%s6684_s1 + $0x2e4] sm:$0xf] }
  0x33   :  { %v3368_v27 = vld [vmem:[%s6684_s1 + $0x460] sm:$0xf]  ;;  %v3769_v30 = vor.u32 %v4400_v23, %v3768_v22  ;;  %v4364_v33 = vld [vmem:[%s6684_s1 + $0x66c] sm:$0xf0]  ;;  %1693 = vmatpush.bf16.msrb.mxu1 %v3513_v25  ;;  %v3178_v16 = vld [vmem:[%s6684_s1 + $0x2f0] sm:$0xf0] }
  0x34   :  { %v3496_v29 = vld [vmem:[%s6684_s1 + $0x560] sm:$0xf]  ;;  %v4396_v35 = vld [vmem:[%s6684_s1 + $0x76c] sm:$0xf0]  ;;  %v3369_v36 = vor.u32 %v4300_v28, %v3368_v27  ;;  %1707 = vmatpush.bf16.msrb.mxu2 %v3641_v26  ;;  %v4282_v18 = vld [vmem:[%s6684_s1 + $0x3e4] sm:$0xf] }
  0x35   :  { %v3624_v32 = vld [vmem:[%s6684_s1 + $0x660] sm:$0xf]  ;;  %v3497_v37 = vor.u32 %v4332_v31, %v3496_v29  ;;  %v4296_v40 = vld [vmem:[%s6684_s1 + $0x44c] sm:$0xf0]  ;;  %1721 = vmatpush.bf16.msrb.mxu3 %v3769_v30  ;;  %v3306_v20 = vld [vmem:[%s6684_s1 + $0x3f0] sm:$0xf0]  ;;  %v2925_v29 = vor.u32 %v4186_v9, %v2922_v12 }
  0x36   :  { %v3752_v34 = vld [vmem:[%s6684_s1 + $0x760] sm:$0xf]  ;;  %v3625_v38 = vor.u32 %v4364_v33, %v3624_v32  ;;  %v4328_v43 = vld [vmem:[%s6684_s1 + $0x54c] sm:$0xf0]  ;;  %1680 = vmatpush.bf16.msrb.mxu0 %v3369_v36  ;;  %v2800_v25 = vld [vmem:[%s6685_s0 + $0x18] sm:$0xf]  ;;  %v3053_v33 = vor.u32 %v4218_v13, %v3050_v14 }
  0x37   :  { %v3352_v39 = vld [vmem:[%s6684_s1 + $0x440] sm:$0xf]  ;;  %v3753_v42 = vor.u32 %v4396_v35, %v3752_v34  ;;  %v4360_v45 = vld [vmem:[%s6684_s1 + $0x64c] sm:$0xf0]  ;;  %1694 = vmatpush.bf16.msrb.mxu1 %v3497_v37  ;;  %v4157_v26 = vld [vmem:[%s6685_s0 + $0x34] sm:$0xf0]  ;;  %v3181_v34 = vor.u32 %v4250_v15, %v3178_v16 }
  0x38   :  { %v3480_v41 = vld [vmem:[%s6684_s1 + $0x540] sm:$0xf]  ;;  %v4392_v47 = vld [vmem:[%s6684_s1 + $0x74c] sm:$0xf0]  ;;  %v3353_v48 = vor.u32 %v4296_v40, %v3352_v39  ;;  %1708 = vmatpush.bf16.msrb.mxu2 %v3625_v38  ;;  %v4152_v27 = vld [vmem:[%s6685_s0 + $0x14] sm:$0xf]  ;;  %v3309_v38 = vor.u32 %v4282_v18, %v3306_v20 }
  0x39   :  { %v3608_v44 = vld [vmem:[%s6684_s1 + $0x640] sm:$0xf]  ;;  %v3481_v50 = vor.u32 %v4328_v43, %v3480_v41  ;;  %v4292_v52 = vld [vmem:[%s6684_s1 + $0x42c] sm:$0xf0]  ;;  %1722 = vmatpush.bf16.msrb.mxu3 %v3753_v42  ;;  %v2794_v30 = vld [vmem:[%s6685_s0 + $0x30] sm:$0xf0]  ;;  %v5031_v43 = vor.u32 %v4157_v26, %v2800_v25 }
  0x3a   :  { %v3736_v46 = vld [vmem:[%s6684_s1 + $0x740] sm:$0xf]  ;;  %v3609_v51 = vor.u32 %v4360_v45, %v3608_v44  ;;  %v4324_v54 = vld [vmem:[%s6684_s1 + $0x52c] sm:$0xf0]  ;;  %1681 = vmatpush.bf16.msrb.mxu0 %v3353_v48  ;;  %v4153_v31 = vld [vmem:[%s6685_s0 + $0x1c] sm:$0xf]  ;;  %v5033_v44 = vor.u32 %v4152_v27, %v2794_v30 }
  0x3b   :  { %v3336_v49 = vld [vmem:[%s6684_s1 + $0x420] sm:$0xf]  ;;  %v3737_v55 = vor.u32 %v4392_v47, %v3736_v46  ;;  %v4356_v57 = vld [vmem:[%s6684_s1 + $0x62c] sm:$0xf0]  ;;  %1695 = vmatpush.bf16.msrb.mxu1 %v3481_v50  ;;  %v2802_v32 = vld [vmem:[%s6685_s0 + $0x38] sm:$0xf0] }
  0x3c   :  { %v3464_v53 = vld [vmem:[%s6684_s1 + $0x520] sm:$0xf]  ;;  %v4388_v60 = vld [vmem:[%s6684_s1 + $0x72c] sm:$0xf0]  ;;  %v3337_v63 = vor.u32 %v4292_v52, %v3336_v49  ;;  %1709 = vmatpush.bf16.msrb.mxu2 %v3609_v51  ;;  %v4182_v35 = vld [vmem:[%s6684_s1 + $0xc4] sm:$0xf]  ;;  %v5041_v47 = vor.u32 %v4153_v31, %v2802_v32 }
  0x3d   :  { %v3592_v56 = vld [vmem:[%s6684_s1 + $0x620] sm:$0xf]  ;;  %v4288_v62 = vld [vmem:[%s6684_s1 + $0x40c] sm:$0xf0]  ;;  %v3465_v5 = vor.u32 %v4324_v54, %v3464_v53  ;;  %1723 = vmatpush.bf16.msrb.mxu3 %v3737_v55  ;;  %v2906_v36 = vld [vmem:[%s6684_s1 + $0xd0] sm:$0xf0] }
  0x3e   :  { %v3720_v59 = vld [vmem:[%s6684_s1 + $0x720] sm:$0xf]  ;;  %v4320_v2 = vld [vmem:[%s6684_s1 + $0x50c] sm:$0xf0]  ;;  %v3593_v6 = vor.u32 %v4356_v57, %v3592_v56  ;;  %1682 = vmatpush.bf16.msrb.mxu0 %v3337_v63  ;;  %v4214_v37 = vld [vmem:[%s6684_s1 + $0x1c4] sm:$0xf]  ;;  %v2909_v48 = vor.u32 %v4182_v35, %v2906_v36 }
  0x3f   :  { %v3320_v61 = vld [vmem:[%s6684_s1 + $0x400] sm:$0xf]  ;;  %v4352_v4 = vld [vmem:[%s6684_s1 + $0x60c] sm:$0xf0]  ;;  %v3721_v11 = vor.u32 %v4388_v60, %v3720_v59  ;;  %1696 = vmatpush.bf16.msrb.mxu1 %v3465_v5  ;;  %v3034_v40 = vld [vmem:[%s6684_s1 + $0x1d0] sm:$0xf0] }
  0x40   :  { %v3448_v0 = vld [vmem:[%s6684_s1 + $0x500] sm:$0xf]  ;;  %v4384_v8 = vld [vmem:[%s6684_s1 + $0x70c] sm:$0xf0]  ;;  %v3321_v19 = vor.u32 %v4288_v62, %v3320_v61  ;;  %1710 = vmatpush.bf16.msrb.mxu2 %v3593_v6  ;;  %v4246_v41 = vld [vmem:[%s6684_s1 + $0x2c4] sm:$0xf]  ;;  %v3037_v49 = vor.u32 %v4214_v37, %v3034_v40 }
  0x41   :  { %v3576_v3 = vld [vmem:[%s6684_s1 + $0x600] sm:$0xf]  ;;  %v2792_v21 = vld [vmem:[%s6685_s0 + $0x10] sm:$0xf]  ;;  %v3449_v23 = vor.u32 %v4320_v2, %v3448_v0  ;;  %1724 = vmatpush.bf16.msrb.mxu3 %v3721_v11  ;;  %v3162_v42 = vld [vmem:[%s6684_s1 + $0x2d0] sm:$0xf0] }
  0x42   :  { %v3704_v7 = vld [vmem:[%s6684_s1 + $0x700] sm:$0xf]  ;;  %v4156_v22 = vld [vmem:[%s6685_s0 + $0x2c] sm:$0xf0]  ;;  %v3577_v24 = vor.u32 %v4352_v4, %v3576_v3  ;;  %1683 = vmatpush.bf16.msrb.mxu0 %v3321_v19  ;;  %v4278_v45 = vld [vmem:[%s6684_s1 + $0x3c4] sm:$0xf]  ;;  %v3165_v50 = vor.u32 %v4246_v41, %v3162_v42 }
  0x43   :  { %v3705_v28 = vor.u32 %v4384_v8, %v3704_v7  ;;  %v5020_v39 = vor.u32 %v4156_v22, %v2792_v21  ;;  %1697 = vmatpush.bf16.msrb.mxu1 %v3449_v23  ;;  %v3290_v46 = vld [vmem:[%s6684_s1 + $0x3d0] sm:$0xf0]  ;;  %v4178_v51 = vld [vmem:[%s6684_s1 + $0xa4] sm:$0xf] }
  0x44   :  { %1711 = vmatpush.bf16.msrb.mxu2 %v3577_v24  ;;  %v2890_v52 = vld [vmem:[%s6684_s1 + $0xb0] sm:$0xf0]  ;;  %v4210_v53 = vld [vmem:[%s6684_s1 + $0x1a4] sm:$0xf]  ;;  %v3293_v54 = vor.u32 %v4278_v45, %v3290_v46 }
  0x45   :  { %1725 = vmatpush.bf16.msrb.mxu3 %v3705_v28  ;;  %1684 = vmatmul.bf16.vlgmr.msrb.gmra.mxu0 %v5020_v39  ;;  %v3018_v55 = vld [vmem:[%s6684_s1 + $0x1b0] sm:$0xf0]  ;;  %v4242_v56 = vld [vmem:[%s6684_s1 + $0x2a4] sm:$0xf]  ;;  %v2893_v61 = vor.u32 %v4178_v51, %v2890_v52 }
  0x46   :  { %1732 = vmatpush.bf16.msra.mxu0 %v2925_v29  ;;  %v3146_v57 = vld [vmem:[%s6684_s1 + $0x2b0] sm:$0xf0]  ;;  %1698 = vmatmul.bf16.vlgmr.msrb.gmra.mxu1 %v5033_v44  ;;  %v4274_v59 = vld [vmem:[%s6684_s1 + $0x3a4] sm:$0xf]  ;;  %v3021_v62 = vor.u32 %v4210_v53, %v3018_v55 }
  0x47   :  { %1746 = vmatpush.bf16.msra.mxu1 %v3053_v33  ;;  %1712 = vmatmul.bf16.vlgmr.msrb.gmra.mxu2 %v5031_v43  ;;  %v3274_v60 = vld [vmem:[%s6684_s1 + $0x3b0] sm:$0xf0]  ;;  %v3149_v63 = vor.u32 %v4242_v56, %v3146_v57  ;;  %v4174_v0 = vld [vmem:[%s6684_s1 + $0x84] sm:$0xf] }
  0x48   :  { %1760 = vmatpush.bf16.msra.mxu2 %v3181_v34  ;;  %1726 = vmatmul.bf16.vlgmr.msrb.gmra.mxu3 %v5041_v47  ;;  %v2874_v2 = vld [vmem:[%s6684_s1 + $0x90] sm:$0xf0]  ;;  %v4206_v3 = vld [vmem:[%s6684_s1 + $0x184] sm:$0xf]  ;;  %v3277_v4 = vor.u32 %v4274_v59, %v3274_v60 }
  0x49   :  { %1774 = vmatpush.bf16.msra.mxu3 %v3309_v38  ;;  %v3002_v5 = vld [vmem:[%s6684_s1 + $0x190] sm:$0xf0]  ;;  %v4238_v6 = vld [vmem:[%s6684_s1 + $0x284] sm:$0xf]  ;;  %v2877_v11 = vor.u32 %v4174_v0, %v2874_v2 }
  0x4a   :  { %1733 = vmatpush.bf16.msra.mxu0 %v2909_v48  ;;  %v3130_v7 = vld [vmem:[%s6684_s1 + $0x290] sm:$0xf0]  ;;  %v4270_v8 = vld [vmem:[%s6684_s1 + $0x384] sm:$0xf]  ;;  %v3005_v12 = vor.u32 %v4206_v3, %v3002_v5 }
  0x4b   :  { %1747 = vmatpush.bf16.msra.mxu1 %v3037_v49  ;;  %v3258_v9 = vld [vmem:[%s6684_s1 + $0x390] sm:$0xf0]  ;;  %v3133_v13 = vor.u32 %v4238_v6, %v3130_v7  ;;  %v4170_v14 = vld [vmem:[%s6684_s1 + $0x64] sm:$0xf] }
  0x4c   :  { %1761 = vmatpush.bf16.msra.mxu2 %v3165_v50  ;;  %v2858_v15 = vld [vmem:[%s6684_s1 + $0x70] sm:$0xf0]  ;;  %v4202_v16 = vld [vmem:[%s6684_s1 + $0x164] sm:$0xf]  ;;  %v3261_v18 = vor.u32 %v4270_v8, %v3258_v9 }
  0x4d   :  { %1775 = vmatpush.bf16.msra.mxu3 %v3293_v54  ;;  %v2986_v19 = vld [vmem:[%s6684_s1 + $0x170] sm:$0xf0]  ;;  %v4234_v20 = vld [vmem:[%s6684_s1 + $0x264] sm:$0xf]  ;;  %v2861_v24 = vor.u32 %v4170_v14, %v2858_v15 }
  0x4e   :  { %1734 = vmatpush.bf16.msra.mxu0 %v2893_v61  ;;  %v3114_v21 = vld [vmem:[%s6684_s1 + $0x270] sm:$0xf0]  ;;  %v4266_v22 = vld [vmem:[%s6684_s1 + $0x364] sm:$0xf]  ;;  %v2989_v25 = vor.u32 %v4202_v16, %v2986_v19 }
  0x4f   :  { %1748 = vmatpush.bf16.msra.mxu1 %v3021_v62  ;;  %v3242_v23 = vld [vmem:[%s6684_s1 + $0x370] sm:$0xf0]  ;;  %v3117_v26 = vor.u32 %v4234_v20, %v3114_v21  ;;  %v4166_v27 = vld [vmem:[%s6684_s1 + $0x44] sm:$0xf] }
  0x50   :  { %1762 = vmatpush.bf16.msra.mxu2 %v3149_v63  ;;  %v2842_v28 = vld [vmem:[%s6684_s1 + $0x50] sm:$0xf0]  ;;  %v4198_v29 = vld [vmem:[%s6684_s1 + $0x144] sm:$0xf]  ;;  %v3245_v30 = vor.u32 %v4266_v22, %v3242_v23 }
  0x51   :  { %1776 = vmatpush.bf16.msra.mxu3 %v3277_v4  ;;  %v2970_v31 = vld [vmem:[%s6684_s1 + $0x150] sm:$0xf0]  ;;  %v4230_v32 = vld [vmem:[%s6684_s1 + $0x244] sm:$0xf]  ;;  %v2845_v36 = vor.u32 %v4166_v27, %v2842_v28 }
  0x52   :  { %1735 = vmatpush.bf16.msra.mxu0 %v2877_v11  ;;  %v3098_v33 = vld [vmem:[%s6684_s1 + $0x250] sm:$0xf0]  ;;  %v4262_v34 = vld [vmem:[%s6684_s1 + $0x344] sm:$0xf]  ;;  %v2973_v37 = vor.u32 %v4198_v29, %v2970_v31 }
  0x53   :  { %1749 = vmatpush.bf16.msra.mxu1 %v3005_v12  ;;  %v3226_v35 = vld [vmem:[%s6684_s1 + $0x350] sm:$0xf0]  ;;  %v3101_v38 = vor.u32 %v4230_v32, %v3098_v33  ;;  %v4162_v40 = vld [vmem:[%s6684_s1 + $0x24] sm:$0xf] }
  0x54   :  { %1763 = vmatpush.bf16.msra.mxu2 %v3133_v13  ;;  %v2826_v41 = vld [vmem:[%s6684_s1 + $0x30] sm:$0xf0]  ;;  %v4194_v42 = vld [vmem:[%s6684_s1 + $0x124] sm:$0xf]  ;;  %v3229_v45 = vor.u32 %v4262_v34, %v3226_v35 }
  0x55   :  { %1777 = vmatpush.bf16.msra.mxu3 %v3261_v18  ;;  %v2954_v46 = vld [vmem:[%s6684_s1 + $0x130] sm:$0xf0]  ;;  %v4226_v48 = vld [vmem:[%s6684_s1 + $0x224] sm:$0xf]  ;;  %v2829_v52 = vor.u32 %v4162_v40, %v2826_v41 }
  0x56   :  { %1736 = vmatpush.bf16.msra.mxu0 %v2861_v24  ;;  %v3082_v49 = vld [vmem:[%s6684_s1 + $0x230] sm:$0xf0]  ;;  %v4258_v50 = vld [vmem:[%s6684_s1 + $0x324] sm:$0xf]  ;;  %v2957_v55 = vor.u32 %v4194_v42, %v2954_v46 }
  0x57   :  { %1750 = vmatpush.bf16.msra.mxu1 %v2989_v25  ;;  %v3210_v51 = vld [vmem:[%s6684_s1 + $0x330] sm:$0xf0]  ;;  %v4158_v53 = vld [vmem:[%s6684_s1 + $0x4] sm:$0xf]  ;;  %v3085_v56 = vor.u32 %v4226_v48, %v3082_v49 }
  0x58   :  { %1764 = vmatpush.bf16.msra.mxu2 %v3117_v26  ;;  %v2810_v54 = vld [vmem:[%s6684_s1 + $0x10] sm:$0xf0]  ;;  %v4190_v57 = vld [vmem:[%s6684_s1 + $0x104] sm:$0xf]  ;;  %v3213_v61 = vor.u32 %v4258_v50, %v3210_v51 }
  0x59   :  { %1778 = vmatpush.bf16.msra.mxu3 %v3245_v30  ;;  %v2938_v59 = vld [vmem:[%s6684_s1 + $0x110] sm:$0xf0]  ;;  %v4222_v60 = vld [vmem:[%s6684_s1 + $0x204] sm:$0xf]  ;;  %v2813_v5 = vor.u32 %v4158_v53, %v2810_v54 }
  0x5a   :  { %1737 = vmatpush.bf16.msra.mxu0 %v2845_v36  ;;  %v3066_v62 = vld [vmem:[%s6684_s1 + $0x210] sm:$0xf0]  ;;  %v4254_v63 = vld [vmem:[%s6684_s1 + $0x304] sm:$0xf]  ;;  %v2941_v9 = vor.u32 %v4190_v57, %v2938_v59 }
  0x5b   :  { %1751 = vmatpush.bf16.msra.mxu1 %v2973_v37  ;;  %v3194_v0 = vld [vmem:[%s6684_s1 + $0x310] sm:$0xf0]  ;;  %v4314_v2 = vld [vmem:[%s6684_s1 + $0x4e4] sm:$0xf]  ;;  %v3069_v11 = vor.u32 %v4222_v60, %v3066_v62 }
  0x5c   :  { %1765 = vmatpush.bf16.msra.mxu2 %v3101_v38  ;;  %v3434_v3 = vld [vmem:[%s6684_s1 + $0x4f0] sm:$0xf0]  ;;  %v4346_v4 = vld [vmem:[%s6684_s1 + $0x5e4] sm:$0xf]  ;;  %v3197_v14 = vor.u32 %v4254_v63, %v3194_v0 }
  0x5d   :  { %1779 = vmatpush.bf16.msra.mxu3 %v3229_v45  ;;  %v3562_v6 = vld [vmem:[%s6684_s1 + $0x5f0] sm:$0xf0]  ;;  %v4378_v7 = vld [vmem:[%s6684_s1 + $0x6e4] sm:$0xf]  ;;  %v3437_v15 = vor.u32 %v4314_v2, %v3434_v3 }
  0x5e   :  { %1738 = vmatpush.bf16.msra.mxu0 %v2829_v52  ;;  %v3690_v8 = vld [vmem:[%s6684_s1 + $0x6f0] sm:$0xf0]  ;;  %v4410_v12 = vld [vmem:[%s6684_s1 + $0x7e4] sm:$0xf]  ;;  %v3565_v16 = vor.u32 %v4346_v4, %v3562_v6 }
  0x5f   :  { %1752 = vmatpush.bf16.msra.mxu1 %v2957_v55  ;;  %v3818_v13 = vld [vmem:[%s6684_s1 + $0x7f0] sm:$0xf0]  ;;  %v3693_v18 = vor.u32 %v4378_v7, %v3690_v8  ;;  %v4310_v19 = vld [vmem:[%s6684_s1 + $0x4c4] sm:$0xf] }
  0x60   :  { %1766 = vmatpush.bf16.msra.mxu2 %v3085_v56  ;;  %v3418_v20 = vld [vmem:[%s6684_s1 + $0x4d0] sm:$0xf0]  ;;  %v4342_v21 = vld [vmem:[%s6684_s1 + $0x5c4] sm:$0xf]  ;;  %v3821_v22 = vor.u32 %v4410_v12, %v3818_v13 }
  0x61   :  { %1780 = vmatpush.bf16.msra.mxu3 %v3213_v61  ;;  %v3546_v23 = vld [vmem:[%s6684_s1 + $0x5d0] sm:$0xf0]  ;;  %v4374_v24 = vld [vmem:[%s6684_s1 + $0x6c4] sm:$0xf]  ;;  %v3421_v28 = vor.u32 %v4310_v19, %v3418_v20 }
  0x62   :  { %1739 = vmatpush.bf16.msra.mxu0 %v2813_v5  ;;  %v3674_v25 = vld [vmem:[%s6684_s1 + $0x6d0] sm:$0xf0]  ;;  %v4406_v26 = vld [vmem:[%s6684_s1 + $0x7c4] sm:$0xf]  ;;  %v3549_v29 = vor.u32 %v4342_v21, %v3546_v23 }
  0x63   :  { %1753 = vmatpush.bf16.msra.mxu1 %v2941_v9  ;;  %v3802_v27 = vld [vmem:[%s6684_s1 + $0x7d0] sm:$0xf0]  ;;  %v3677_v30 = vor.u32 %v4374_v24, %v3674_v25  ;;  %v4306_v31 = vld [vmem:[%s6684_s1 + $0x4a4] sm:$0xf] }
  0x64   :  { %1767 = vmatpush.bf16.msra.mxu2 %v3069_v11  ;;  %v3402_v32 = vld [vmem:[%s6684_s1 + $0x4b0] sm:$0xf0]  ;;  %v4338_v33 = vld [vmem:[%s6684_s1 + $0x5a4] sm:$0xf]  ;;  %v3805_v34 = vor.u32 %v4406_v26, %v3802_v27 }
  0x65   :  { %1781 = vmatpush.bf16.msra.mxu3 %v3197_v14  ;;  %v3530_v35 = vld [vmem:[%s6684_s1 + $0x5b0] sm:$0xf0]  ;;  %v4370_v36 = vld [vmem:[%s6684_s1 + $0x6a4] sm:$0xf]  ;;  %1740 = vmatmul.bf16.vlgmr.msra.gmra.mxu0 %v4798_v58  ;;  %v3405_v41 = vor.u32 %v4306_v31, %v3402_v32 }
  0x66   :  { %1788 = vmatpush.bf16.msrb.mxu0 %v3437_v15  ;;  %v3658_v37 = vld [vmem:[%s6684_s1 + $0x6b0] sm:$0xf0]  ;;  %v4402_v38 = vld [vmem:[%s6684_s1 + $0x7a4] sm:$0xf]  ;;  %1754 = vmatmul.bf16.vlgmr.msra.gmra.mxu1 %v4834_v10  ;;  %v3533_v42 = vor.u32 %v4338_v33, %v3530_v35 }
  0x67   :  { %1802 = vmatpush.bf16.msrb.mxu1 %v3565_v16  ;;  %v3786_v40 = vld [vmem:[%s6684_s1 + $0x7b0] sm:$0xf0]  ;;  %1768 = vmatmul.bf16.vlgmr.msra.gmra.mxu2 %v4812_v1  ;;  %v3661_v45 = vor.u32 %v4370_v36, %v3658_v37  ;;  %v4302_v46 = vld [vmem:[%s6684_s1 + $0x484] sm:$0xf] }
  0x68   :  { %1816 = vmatpush.bf16.msrb.mxu2 %v3693_v18  ;;  %1782 = vmatmul.bf16.vlgmr.msra.gmra.mxu3 %v4848_v17  ;;  %v3386_v48 = vld [vmem:[%s6684_s1 + $0x490] sm:$0xf0]  ;;  %v4334_v49 = vld [vmem:[%s6684_s1 + $0x584] sm:$0xf]  ;;  %v3789_v50 = vor.u32 %v4402_v38, %v3786_v40 }
  0x69   :  { %1830 = vmatpush.bf16.msrb.mxu3 %v3821_v22  ;;  %v3514_v51 = vld [vmem:[%s6684_s1 + $0x590] sm:$0xf0]  ;;  %v4366_v52 = vld [vmem:[%s6684_s1 + $0x684] sm:$0xf]  ;;  %v3389_v56 = vor.u32 %v4302_v46, %v3386_v48  ;;  %v2928_v48 = vld [vmem:[%s6684_s1 + $0xe8] sm:$0xf] }
  0x6a   :  { %1789 = vmatpush.bf16.msrb.mxu0 %v3421_v28  ;;  %v3642_v53 = vld [vmem:[%s6684_s1 + $0x690] sm:$0xf0]  ;;  %v4398_v54 = vld [vmem:[%s6684_s1 + $0x784] sm:$0xf]  ;;  %v3517_v57 = vor.u32 %v4334_v49, %v3514_v51  ;;  %v4189_v49 = vld [vmem:[%s6684_s1 + $0xf4] sm:$0xf0] }
  0x6b   :  { %1803 = vmatpush.bf16.msrb.mxu1 %v3549_v29  ;;  %v3770_v55 = vld [vmem:[%s6684_s1 + $0x790] sm:$0xf0]  ;;  %v3645_v59 = vor.u32 %v4366_v52, %v3642_v53  ;;  %v4298_v60 = vld [vmem:[%s6684_s1 + $0x464] sm:$0xf]  ;;  %v4221_v52 = vld [vmem:[%s6684_s1 + $0x1f4] sm:$0xf0] }
  0x6c   :  { %1817 = vmatpush.bf16.msrb.mxu2 %v3677_v30  ;;  %v3370_v61 = vld [vmem:[%s6684_s1 + $0x470] sm:$0xf0]  ;;  %v4330_v62 = vld [vmem:[%s6684_s1 + $0x564] sm:$0xf]  ;;  %v3773_v63 = vor.u32 %v4398_v54, %v3770_v55  ;;  %v3184_v53 = vld [vmem:[%s6684_s1 + $0x2e8] sm:$0xf] }
  0x6d   :  { %1831 = vmatpush.bf16.msrb.mxu3 %v3805_v34  ;;  %v3498_v0 = vld [vmem:[%s6684_s1 + $0x570] sm:$0xf0]  ;;  %v4362_v2 = vld [vmem:[%s6684_s1 + $0x664] sm:$0xf]  ;;  %v3373_v6 = vor.u32 %v4298_v60, %v3370_v61  ;;  %v4253_v54 = vld [vmem:[%s6684_s1 + $0x2f4] sm:$0xf0]  ;;  %v2929_v61 = vor.u32 %v4189_v49, %v2928_v48 }
  0x6e   :  { %1790 = vmatpush.bf16.msrb.mxu0 %v3405_v41  ;;  %v3626_v3 = vld [vmem:[%s6684_s1 + $0x670] sm:$0xf0]  ;;  %v4394_v4 = vld [vmem:[%s6684_s1 + $0x764] sm:$0xf]  ;;  %v3501_v7 = vor.u32 %v4330_v62, %v3498_v0  ;;  %v2912_v0 = vld [vmem:[%s6684_s1 + $0xc8] sm:$0xf] }
  0x6f   :  { %1804 = vmatpush.bf16.msrb.mxu1 %v3533_v42  ;;  %v3754_v5 = vld [vmem:[%s6684_s1 + $0x770] sm:$0xf0]  ;;  %v3629_v8 = vor.u32 %v4362_v2, %v3626_v3  ;;  %v4294_v9 = vld [vmem:[%s6684_s1 + $0x444] sm:$0xf]  ;;  %v4185_v2 = vld [vmem:[%s6684_s1 + $0xd4] sm:$0xf0] }
  0x70   :  { %1818 = vmatpush.bf16.msrb.mxu2 %v3661_v45  ;;  %v3354_v11 = vld [vmem:[%s6684_s1 + $0x450] sm:$0xf0]  ;;  %v4326_v12 = vld [vmem:[%s6684_s1 + $0x544] sm:$0xf]  ;;  %v3757_v13 = vor.u32 %v4394_v4, %v3754_v5  ;;  %v3040_v3 = vld [vmem:[%s6684_s1 + $0x1c8] sm:$0xf] }
  0x71   :  { %1832 = vmatpush.bf16.msrb.mxu3 %v3789_v50  ;;  %v3482_v14 = vld [vmem:[%s6684_s1 + $0x550] sm:$0xf0]  ;;  %v4358_v15 = vld [vmem:[%s6684_s1 + $0x644] sm:$0xf]  ;;  %v3357_v20 = vor.u32 %v4294_v9, %v3354_v11  ;;  %v3056_v50 = vld [vmem:[%s6684_s1 + $0x1e8] sm:$0xf]  ;;  %v2913_v11 = vor.u32 %v4185_v2, %v2912_v0 }
  0x72   :  { %1791 = vmatpush.bf16.msrb.mxu0 %v3389_v56  ;;  %v3610_v16 = vld [vmem:[%s6684_s1 + $0x650] sm:$0xf0]  ;;  %v4390_v18 = vld [vmem:[%s6684_s1 + $0x744] sm:$0xf]  ;;  %v3485_v21 = vor.u32 %v4326_v12, %v3482_v14  ;;  %v3057_v62 = vor.u32 %v4221_v52, %v3056_v50  ;;  %v4217_v5 = vld [vmem:[%s6684_s1 + $0x1d4] sm:$0xf0] }
  0x73   :  { %1805 = vmatpush.bf16.msrb.mxu1 %v3517_v57  ;;  %v3738_v19 = vld [vmem:[%s6684_s1 + $0x750] sm:$0xf0]  ;;  %v3613_v22 = vor.u32 %v4358_v15, %v3610_v16  ;;  %v4290_v23 = vld [vmem:[%s6684_s1 + $0x424] sm:$0xf]  ;;  %v3312_v57 = vld [vmem:[%s6684_s1 + $0x3e8] sm:$0xf]  ;;  %v3041_v12 = vor.u32 %v4217_v5, %v3040_v3 }
  0x74   :  { %1819 = vmatpush.bf16.msrb.mxu2 %v3645_v59  ;;  %v3338_v24 = vld [vmem:[%s6684_s1 + $0x430] sm:$0xf0]  ;;  %v4322_v25 = vld [vmem:[%s6684_s1 + $0x524] sm:$0xf]  ;;  %v3741_v26 = vor.u32 %v4390_v18, %v3738_v19  ;;  %v4285_v59 = vld [vmem:[%s6684_s1 + $0x3f4] sm:$0xf0] }
  0x75   :  { %1833 = vmatpush.bf16.msrb.mxu3 %v3773_v63  ;;  %v3466_v27 = vld [vmem:[%s6684_s1 + $0x530] sm:$0xf0]  ;;  %v4354_v28 = vld [vmem:[%s6684_s1 + $0x624] sm:$0xf]  ;;  %v3341_v32 = vor.u32 %v4290_v23, %v3338_v24  ;;  %v3185_v63 = vor.u32 %v4253_v54, %v3184_v53  ;;  %v3313_v4 = vor.u32 %v4285_v59, %v3312_v57  ;;  %v4281_v9 = vld [vmem:[%s6684_s1 + $0x3d4] sm:$0xf0] }
  0x76   :  { %1792 = vmatpush.bf16.msrb.mxu0 %v3373_v6  ;;  %v3594_v29 = vld [vmem:[%s6684_s1 + $0x630] sm:$0xf0]  ;;  %v4386_v30 = vld [vmem:[%s6684_s1 + $0x724] sm:$0xf]  ;;  %v3469_v35 = vor.u32 %v4322_v25, %v3466_v27  ;;  %v3168_v6 = vld [vmem:[%s6684_s1 + $0x2c8] sm:$0xf] }
  0x77   :  { %1806 = vmatpush.bf16.msrb.mxu1 %v3501_v7  ;;  %v3722_v31 = vld [vmem:[%s6684_s1 + $0x730] sm:$0xf0]  ;;  %v4286_v33 = vld [vmem:[%s6684_s1 + $0x404] sm:$0xf]  ;;  %v3597_v36 = vor.u32 %v4354_v28, %v3594_v29  ;;  %v4249_v7 = vld [vmem:[%s6684_s1 + $0x2d4] sm:$0xf0] }
  0x78   :  { %1820 = vmatpush.bf16.msrb.mxu2 %v3629_v8  ;;  %v3322_v34 = vld [vmem:[%s6684_s1 + $0x410] sm:$0xf0]  ;;  %v4318_v37 = vld [vmem:[%s6684_s1 + $0x504] sm:$0xf]  ;;  %v3725_v41 = vor.u32 %v4386_v30, %v3722_v31  ;;  %v3296_v8 = vld [vmem:[%s6684_s1 + $0x3c8] sm:$0xf] }
  0x79   :  { %1834 = vmatpush.bf16.msrb.mxu3 %v3757_v13  ;;  %v3450_v38 = vld [vmem:[%s6684_s1 + $0x510] sm:$0xf0]  ;;  %v4350_v40 = vld [vmem:[%s6684_s1 + $0x604] sm:$0xf]  ;;  %v3325_v51 = vor.u32 %v4286_v33, %v3322_v34  ;;  %v3169_v13 = vor.u32 %v4249_v7, %v3168_v6  ;;  %v2896_v14 = vld [vmem:[%s6684_s1 + $0xa8] sm:$0xf]  ;;  %v3297_v18 = vor.u32 %v4281_v9, %v3296_v8 }
  0x7a   :  { %1793 = vmatpush.bf16.msrb.mxu0 %v3357_v20  ;;  %v3578_v42 = vld [vmem:[%s6684_s1 + $0x610] sm:$0xf0]  ;;  %v4382_v45 = vld [vmem:[%s6684_s1 + $0x704] sm:$0xf]  ;;  %v3453_v55 = vor.u32 %v4318_v37, %v3450_v38  ;;  %v4181_v15 = vld [vmem:[%s6684_s1 + $0xb4] sm:$0xf0] }
  0x7b   :  { %1807 = vmatpush.bf16.msrb.mxu1 %v3485_v21  ;;  %v3706_v46 = vld [vmem:[%s6684_s1 + $0x710] sm:$0xf0]  ;;  %v3581_v56 = vor.u32 %v4350_v40, %v3578_v42  ;;  %v3024_v16 = vld [vmem:[%s6684_s1 + $0x1a8] sm:$0xf]  ;;  %v4213_v19 = vld [vmem:[%s6684_s1 + $0x1b4] sm:$0xf0]  ;;  %v2897_v24 = vor.u32 %v4181_v15, %v2896_v14 }
  0x7c   :  { %1821 = vmatpush.bf16.msrb.mxu2 %v3613_v22  ;;  %v3709_v60 = vor.u32 %v4382_v45, %v3706_v46  ;;  %v3152_v20 = vld [vmem:[%s6684_s1 + $0x2a8] sm:$0xf]  ;;  %v4245_v21 = vld [vmem:[%s6684_s1 + $0x2b4] sm:$0xf0]  ;;  %v3025_v25 = vor.u32 %v4213_v19, %v3024_v16 }
  0x7d   :  { %1835 = vmatpush.bf16.msrb.mxu3 %v3741_v26  ;;  %v3280_v22 = vld [vmem:[%s6684_s1 + $0x3a8] sm:$0xf]  ;;  %v4277_v23 = vld [vmem:[%s6684_s1 + $0x3b4] sm:$0xf0]  ;;  %v3153_v26 = vor.u32 %v4245_v21, %v3152_v20 }
  0x7e   :  { %1794 = vmatpush.bf16.msrb.mxu0 %v3341_v32  ;;  %v2880_v27 = vld [vmem:[%s6684_s1 + $0x88] sm:$0xf]  ;;  %v4177_v28 = vld [vmem:[%s6684_s1 + $0x94] sm:$0xf0]  ;;  %v3281_v30 = vor.u32 %v4277_v23, %v3280_v22 }
  0x7f   :  { %1808 = vmatpush.bf16.msrb.mxu1 %v3469_v35  ;;  %v3008_v29 = vld [vmem:[%s6684_s1 + $0x188] sm:$0xf]  ;;  %v4209_v31 = vld [vmem:[%s6684_s1 + $0x194] sm:$0xf0] }
  0x80   :  { %1822 = vmatpush.bf16.msrb.mxu2 %v3597_v36  ;;  %v3136_v32 = vld [vmem:[%s6684_s1 + $0x288] sm:$0xf]  ;;  %v4241_v33 = vld [vmem:[%s6684_s1 + $0x294] sm:$0xf0]  ;;  %v2881_v36 = vor.u32 %v4177_v28, %v2880_v27  ;;  %v3009_v37 = vor.u32 %v4209_v31, %v3008_v29 }
  0x81   :  { %1836 = vmatpush.bf16.msrb.mxu3 %v3725_v41  ;;  %v3264_v34 = vld [vmem:[%s6684_s1 + $0x388] sm:$0xf]  ;;  %v4273_v35 = vld [vmem:[%s6684_s1 + $0x394] sm:$0xf0]  ;;  %v3137_v38 = vor.u32 %v4241_v33, %v3136_v32 }
  0x82   :  { %1795 = vmatpush.bf16.msrb.mxu0 %v3325_v51  ;;  %v2864_v40 = vld [vmem:[%s6684_s1 + $0x68] sm:$0xf]  ;;  %v4173_v41 = vld [vmem:[%s6684_s1 + $0x74] sm:$0xf0]  ;;  %v3265_v45 = vor.u32 %v4273_v35, %v3264_v34 }
  0x83   :  { %1809 = vmatpush.bf16.msrb.mxu1 %v3453_v55  ;;  %v2992_v42 = vld [vmem:[%s6684_s1 + $0x168] sm:$0xf]  ;;  %v4205_v46 = vld [vmem:[%s6684_s1 + $0x174] sm:$0xf0]  ;;  %v2865_v52 = vor.u32 %v4173_v41, %v2864_v40 }
  0x84   :  { %1823 = vmatpush.bf16.msrb.mxu2 %v3581_v56  ;;  %v3120_v48 = vld [vmem:[%s6684_s1 + $0x268] sm:$0xf]  ;;  %v4237_v49 = vld [vmem:[%s6684_s1 + $0x274] sm:$0xf0]  ;;  %v2993_v53 = vor.u32 %v4205_v46, %v2992_v42 }
  0x85   :  { %1837 = vmatpush.bf16.msrb.mxu3 %v3709_v60  ;;  %1796 = vmatmul.bf16.vlgmr.msrb.gmra.mxu0 %v5020_v39  ;;  %v3248_v50 = vld [vmem:[%s6684_s1 + $0x368] sm:$0xf]  ;;  %v4269_v51 = vld [vmem:[%s6684_s1 + $0x374] sm:$0xf0]  ;;  %v3121_v54 = vor.u32 %v4237_v49, %v3120_v48 }
  0x86   :  { %1844 = vmatpush.bf16.msra.mxu0 %v2929_v61  ;;  %1810 = vmatmul.bf16.vlgmr.msrb.gmra.mxu1 %v5033_v44  ;;  %v2848_v55 = vld [vmem:[%s6684_s1 + $0x48] sm:$0xf]  ;;  %v4169_v56 = vld [vmem:[%s6684_s1 + $0x54] sm:$0xf0]  ;;  %v3249_v59 = vor.u32 %v4269_v51, %v3248_v50 }
  0x87   :  { %1858 = vmatpush.bf16.msra.mxu1 %v3057_v62  ;;  %1824 = vmatmul.bf16.vlgmr.msrb.gmra.mxu2 %v5031_v43  ;;  %v2976_v57 = vld [vmem:[%s6684_s1 + $0x148] sm:$0xf]  ;;  %v4201_v60 = vld [vmem:[%s6684_s1 + $0x154] sm:$0xf0]  ;;  %v2849_v2 = vor.u32 %v4169_v56, %v2848_v55 }
  0x88   :  { %1872 = vmatpush.bf16.msra.mxu2 %v3185_v63  ;;  %1838 = vmatmul.bf16.vlgmr.msrb.gmra.mxu3 %v5041_v47  ;;  %v3104_v61 = vld [vmem:[%s6684_s1 + $0x248] sm:$0xf]  ;;  %v4233_v62 = vld [vmem:[%s6684_s1 + $0x254] sm:$0xf0]  ;;  %v2977_v3 = vor.u32 %v4201_v60, %v2976_v57 }
  0x89   :  { %1886 = vmatpush.bf16.msra.mxu3 %v3313_v4  ;;  %v3232_v63 = vld [vmem:[%s6684_s1 + $0x348] sm:$0xf]  ;;  %v4265_v0 = vld [vmem:[%s6684_s1 + $0x354] sm:$0xf0]  ;;  %v3105_v4 = vor.u32 %v4233_v62, %v3104_v61 }
  0x8a   :  { %1845 = vmatpush.bf16.msra.mxu0 %v2913_v11  ;;  %v2832_v5 = vld [vmem:[%s6684_s1 + $0x28] sm:$0xf]  ;;  %v4165_v6 = vld [vmem:[%s6684_s1 + $0x34] sm:$0xf0]  ;;  %v3233_v8 = vor.u32 %v4265_v0, %v3232_v63 }
  0x8b   :  { %1859 = vmatpush.bf16.msra.mxu1 %v3041_v12  ;;  %v2960_v7 = vld [vmem:[%s6684_s1 + $0x128] sm:$0xf]  ;;  %v4197_v9 = vld [vmem:[%s6684_s1 + $0x134] sm:$0xf0]  ;;  %v2833_v15 = vor.u32 %v4165_v6, %v2832_v5 }
  0x8c   :  { %1873 = vmatpush.bf16.msra.mxu2 %v3169_v13  ;;  %v3088_v11 = vld [vmem:[%s6684_s1 + $0x228] sm:$0xf]  ;;  %v4229_v12 = vld [vmem:[%s6684_s1 + $0x234] sm:$0xf0]  ;;  %v2961_v19 = vor.u32 %v4197_v9, %v2960_v7 }
  0x8d   :  { %1887 = vmatpush.bf16.msra.mxu3 %v3297_v18  ;;  %v3216_v13 = vld [vmem:[%s6684_s1 + $0x328] sm:$0xf]  ;;  %v4261_v14 = vld [vmem:[%s6684_s1 + $0x334] sm:$0xf0]  ;;  %v3089_v20 = vor.u32 %v4229_v12, %v3088_v11 }
  0x8e   :  { %1846 = vmatpush.bf16.msra.mxu0 %v2897_v24  ;;  %v2816_v16 = vld [vmem:[%s6684_s1 + $0x8] sm:$0xf]  ;;  %v4161_v18 = vld [vmem:[%s6684_s1 + $0x14] sm:$0xf0]  ;;  %v3217_v24 = vor.u32 %v4261_v14, %v3216_v13 }
  0x8f   :  { %1860 = vmatpush.bf16.msra.mxu1 %v3025_v25  ;;  %v2944_v21 = vld [vmem:[%s6684_s1 + $0x108] sm:$0xf]  ;;  %v4193_v22 = vld [vmem:[%s6684_s1 + $0x114] sm:$0xf0]  ;;  %v2817_v31 = vor.u32 %v4161_v18, %v2816_v16 }
  0x90   :  { %1874 = vmatpush.bf16.msra.mxu2 %v3153_v26  ;;  %v3072_v23 = vld [vmem:[%s6684_s1 + $0x208] sm:$0xf]  ;;  %v4225_v25 = vld [vmem:[%s6684_s1 + $0x214] sm:$0xf0]  ;;  %v2945_v35 = vor.u32 %v4193_v22, %v2944_v21 }
  0x91   :  { %1888 = vmatpush.bf16.msra.mxu3 %v3281_v30  ;;  %v3200_v26 = vld [vmem:[%s6684_s1 + $0x308] sm:$0xf]  ;;  %v4257_v27 = vld [vmem:[%s6684_s1 + $0x314] sm:$0xf0] }
  0x92   :  { %1847 = vmatpush.bf16.msra.mxu0 %v2881_v36  ;;  %v3440_v28 = vld [vmem:[%s6684_s1 + $0x4e8] sm:$0xf]  ;;  %v4317_v29 = vld [vmem:[%s6684_s1 + $0x4f4] sm:$0xf0]  ;;  %v3073_v36 = vor.u32 %v4225_v25, %v3072_v23  ;;  %v3201_v40 = vor.u32 %v4257_v27, %v3200_v26 }
  0x93   :  { %1861 = vmatpush.bf16.msra.mxu1 %v3009_v37  ;;  %v3568_v30 = vld [vmem:[%s6684_s1 + $0x5e8] sm:$0xf]  ;;  %v4349_v32 = vld [vmem:[%s6684_s1 + $0x5f4] sm:$0xf0]  ;;  %v3441_v41 = vor.u32 %v4317_v29, %v3440_v28 }
  0x94   :  { %1875 = vmatpush.bf16.msra.mxu2 %v3137_v38  ;;  %v3696_v33 = vld [vmem:[%s6684_s1 + $0x6e8] sm:$0xf]  ;;  %v4381_v34 = vld [vmem:[%s6684_s1 + $0x6f4] sm:$0xf0]  ;;  %v3569_v42 = vor.u32 %v4349_v32, %v3568_v30 }
  0x95   :  { %1889 = vmatpush.bf16.msra.mxu3 %v3265_v45  ;;  %v3824_v37 = vld [vmem:[%s6684_s1 + $0x7e8] sm:$0xf]  ;;  %v4413_v38 = vld [vmem:[%s6684_s1 + $0x7f4] sm:$0xf0]  ;;  %v3697_v45 = vor.u32 %v4381_v34, %v3696_v33 }
  0x96   :  { %1848 = vmatpush.bf16.msra.mxu0 %v2865_v52  ;;  %v3424_v46 = vld [vmem:[%s6684_s1 + $0x4c8] sm:$0xf]  ;;  %v4313_v48 = vld [vmem:[%s6684_s1 + $0x4d4] sm:$0xf0]  ;;  %v3825_v50 = vor.u32 %v4413_v38, %v3824_v37 }
  0x97   :  { %1862 = vmatpush.bf16.msra.mxu1 %v2993_v53  ;;  %v3552_v49 = vld [vmem:[%s6684_s1 + $0x5c8] sm:$0xf]  ;;  %v4345_v51 = vld [vmem:[%s6684_s1 + $0x5d4] sm:$0xf0]  ;;  %v3425_v56 = vor.u32 %v4313_v48, %v3424_v46 }
  0x98   :  { %1876 = vmatpush.bf16.msra.mxu2 %v3121_v54  ;;  %v3680_v52 = vld [vmem:[%s6684_s1 + $0x6c8] sm:$0xf]  ;;  %v4377_v53 = vld [vmem:[%s6684_s1 + $0x6d4] sm:$0xf0]  ;;  %v3553_v57 = vor.u32 %v4345_v51, %v3552_v49 }
  0x99   :  { %1890 = vmatpush.bf16.msra.mxu3 %v3249_v59  ;;  %v3808_v54 = vld [vmem:[%s6684_s1 + $0x7c8] sm:$0xf]  ;;  %v4409_v55 = vld [vmem:[%s6684_s1 + $0x7d4] sm:$0xf0]  ;;  %v3681_v59 = vor.u32 %v4377_v53, %v3680_v52 }
  0x9a   :  { %1849 = vmatpush.bf16.msra.mxu0 %v2849_v2  ;;  %v3408_v60 = vld [vmem:[%s6684_s1 + $0x4a8] sm:$0xf]  ;;  %v4309_v61 = vld [vmem:[%s6684_s1 + $0x4b4] sm:$0xf0]  ;;  %v3809_v63 = vor.u32 %v4409_v55, %v3808_v54 }
  0x9b   :  { %1863 = vmatpush.bf16.msra.mxu1 %v2977_v3  ;;  %v3536_v62 = vld [vmem:[%s6684_s1 + $0x5a8] sm:$0xf]  ;;  %v4341_v0 = vld [vmem:[%s6684_s1 + $0x5b4] sm:$0xf0]  ;;  %v3409_v6 = vor.u32 %v4309_v61, %v3408_v60 }
  0x9c   :  { %1877 = vmatpush.bf16.msra.mxu2 %v3105_v4  ;;  %v3664_v2 = vld [vmem:[%s6684_s1 + $0x6a8] sm:$0xf]  ;;  %v4373_v3 = vld [vmem:[%s6684_s1 + $0x6b4] sm:$0xf0]  ;;  %v3537_v7 = vor.u32 %v4341_v0, %v3536_v62 }
  0x9d   :  { %1891 = vmatpush.bf16.msra.mxu3 %v3233_v8  ;;  %v3792_v4 = vld [vmem:[%s6684_s1 + $0x7a8] sm:$0xf]  ;;  %v4405_v5 = vld [vmem:[%s6684_s1 + $0x7b4] sm:$0xf0]  ;;  %v3665_v8 = vor.u32 %v4373_v3, %v3664_v2 }
  0x9e   :  { %1850 = vmatpush.bf16.msra.mxu0 %v2833_v15  ;;  %v3392_v9 = vld [vmem:[%s6684_s1 + $0x488] sm:$0xf]  ;;  %v4305_v11 = vld [vmem:[%s6684_s1 + $0x494] sm:$0xf0]  ;;  %v3793_v13 = vor.u32 %v4405_v5, %v3792_v4 }
  0x9f   :  { %1864 = vmatpush.bf16.msra.mxu1 %v2961_v19  ;;  %v3520_v12 = vld [vmem:[%s6684_s1 + $0x588] sm:$0xf]  ;;  %v4337_v14 = vld [vmem:[%s6684_s1 + $0x594] sm:$0xf0] }
  0xa0   :  { %1878 = vmatpush.bf16.msra.mxu2 %v3089_v20  ;;  %v3648_v15 = vld [vmem:[%s6684_s1 + $0x688] sm:$0xf]  ;;  %v4369_v16 = vld [vmem:[%s6684_s1 + $0x694] sm:$0xf0]  ;;  %v3393_v20 = vor.u32 %v4305_v11, %v3392_v9  ;;  %v3521_v21 = vor.u32 %v4337_v14, %v3520_v12  ;;  %v4187_v11 = vld [vmem:[%s6684_s1 + $0xec] sm:$0xf] }
  0xa1   :  { %1892 = vmatpush.bf16.msra.mxu3 %v3217_v24  ;;  %v3776_v18 = vld [vmem:[%s6684_s1 + $0x788] sm:$0xf]  ;;  %v4401_v19 = vld [vmem:[%s6684_s1 + $0x794] sm:$0xf0]  ;;  %v3649_v22 = vor.u32 %v4369_v16, %v3648_v15  ;;  %v2930_v12 = vld [vmem:[%s6684_s1 + $0xf8] sm:$0xf0] }
  0xa2   :  { %1851 = vmatpush.bf16.msra.mxu0 %v2817_v31  ;;  %v3376_v23 = vld [vmem:[%s6684_s1 + $0x468] sm:$0xf]  ;;  %v4301_v24 = vld [vmem:[%s6684_s1 + $0x474] sm:$0xf0]  ;;  %v3777_v26 = vor.u32 %v4401_v19, %v3776_v18  ;;  %v3058_v15 = vld [vmem:[%s6684_s1 + $0x1f8] sm:$0xf0] }
  0xa3   :  { %1865 = vmatpush.bf16.msra.mxu1 %v2945_v35  ;;  %v3504_v25 = vld [vmem:[%s6684_s1 + $0x568] sm:$0xf]  ;;  %v4333_v27 = vld [vmem:[%s6684_s1 + $0x574] sm:$0xf0]  ;;  %v3377_v32 = vor.u32 %v4301_v24, %v3376_v23  ;;  %v4251_v16 = vld [vmem:[%s6684_s1 + $0x2ec] sm:$0xf]  ;;  %v2933_v24 = vor.u32 %v4187_v11, %v2930_v12 }
  0xa4   :  { %1879 = vmatpush.bf16.msra.mxu2 %v3073_v36  ;;  %v3632_v28 = vld [vmem:[%s6684_s1 + $0x668] sm:$0xf]  ;;  %v4365_v29 = vld [vmem:[%s6684_s1 + $0x674] sm:$0xf0]  ;;  %v3505_v33 = vor.u32 %v4333_v27, %v3504_v25  ;;  %v3186_v18 = vld [vmem:[%s6684_s1 + $0x2f8] sm:$0xf0] }
  0xa5   :  { %1893 = vmatpush.bf16.msra.mxu3 %v3201_v40  ;;  %1852 = vmatmul.bf16.vlgmr.msra.gmra.mxu0 %v4798_v58  ;;  %v3760_v30 = vld [vmem:[%s6684_s1 + $0x768] sm:$0xf]  ;;  %v4397_v31 = vld [vmem:[%s6684_s1 + $0x774] sm:$0xf0]  ;;  %v3633_v34 = vor.u32 %v4365_v29, %v3632_v28  ;;  %v4183_v27 = vld [vmem:[%s6684_s1 + $0xcc] sm:$0xf] }
  0xa6   :  { %1900 = vmatpush.bf16.msrb.mxu0 %v3441_v41  ;;  %1866 = vmatmul.bf16.vlgmr.msra.gmra.mxu1 %v4834_v10  ;;  %v3360_v35 = vld [vmem:[%s6684_s1 + $0x448] sm:$0xf]  ;;  %v4297_v36 = vld [vmem:[%s6684_s1 + $0x454] sm:$0xf0]  ;;  %v3761_v38 = vor.u32 %v4397_v31, %v3760_v30  ;;  %v2914_v28 = vld [vmem:[%s6684_s1 + $0xd8] sm:$0xf0] }
  0xa7   :  { %1914 = vmatpush.bf16.msrb.mxu1 %v3569_v42  ;;  %1880 = vmatmul.bf16.vlgmr.msra.gmra.mxu2 %v4812_v1  ;;  %v3488_v37 = vld [vmem:[%s6684_s1 + $0x548] sm:$0xf]  ;;  %v4329_v40 = vld [vmem:[%s6684_s1 + $0x554] sm:$0xf0]  ;;  %v3361_v48 = vor.u32 %v4297_v36, %v3360_v35  ;;  %v4215_v29 = vld [vmem:[%s6684_s1 + $0x1cc] sm:$0xf]  ;;  %v2917_v36 = vor.u32 %v4183_v27, %v2914_v28 }
  0xa8   :  { %1928 = vmatpush.bf16.msrb.mxu2 %v3697_v45  ;;  %1894 = vmatmul.bf16.vlgmr.msra.gmra.mxu3 %v4848_v17  ;;  %v3616_v41 = vld [vmem:[%s6684_s1 + $0x648] sm:$0xf]  ;;  %v4361_v42 = vld [vmem:[%s6684_s1 + $0x654] sm:$0xf0]  ;;  %v3489_v49 = vor.u32 %v4329_v40, %v3488_v37  ;;  %v3042_v31 = vld [vmem:[%s6684_s1 + $0x1d8] sm:$0xf0] }
  0xa9   :  { %1942 = vmatpush.bf16.msrb.mxu3 %v3825_v50  ;;  %v3744_v45 = vld [vmem:[%s6684_s1 + $0x748] sm:$0xf]  ;;  %v4393_v46 = vld [vmem:[%s6684_s1 + $0x754] sm:$0xf0]  ;;  %v3617_v50 = vor.u32 %v4361_v42, %v3616_v41  ;;  %v3298_v35 = vld [vmem:[%s6684_s1 + $0x3d8] sm:$0xf0]  ;;  %v3045_v37 = vor.u32 %v4215_v29, %v3042_v31 }
  0xaa   :  { %1901 = vmatpush.bf16.msrb.mxu0 %v3425_v56  ;;  %v3344_v51 = vld [vmem:[%s6684_s1 + $0x428] sm:$0xf]  ;;  %v4293_v52 = vld [vmem:[%s6684_s1 + $0x434] sm:$0xf0]  ;;  %v3745_v54 = vor.u32 %v4393_v46, %v3744_v45  ;;  %v4179_v40 = vld [vmem:[%s6684_s1 + $0xac] sm:$0xf] }
  0xab   :  { %1915 = vmatpush.bf16.msrb.mxu1 %v3553_v57  ;;  %v3472_v53 = vld [vmem:[%s6684_s1 + $0x528] sm:$0xf]  ;;  %v4325_v55 = vld [vmem:[%s6684_s1 + $0x534] sm:$0xf0]  ;;  %v3345_v61 = vor.u32 %v4293_v52, %v3344_v51  ;;  %v2898_v41 = vld [vmem:[%s6684_s1 + $0xb8] sm:$0xf0] }
  0xac   :  { %1929 = vmatpush.bf16.msrb.mxu2 %v3681_v59  ;;  %v3600_v56 = vld [vmem:[%s6684_s1 + $0x628] sm:$0xf]  ;;  %v4357_v57 = vld [vmem:[%s6684_s1 + $0x634] sm:$0xf0]  ;;  %v3473_v0 = vor.u32 %v4325_v55, %v3472_v53  ;;  %v4211_v42 = vld [vmem:[%s6684_s1 + $0x1ac] sm:$0xf]  ;;  %v2901_v52 = vor.u32 %v4179_v40, %v2898_v41 }
  0xad   :  { %1943 = vmatpush.bf16.msrb.mxu3 %v3809_v63  ;;  %v3728_v59 = vld [vmem:[%s6684_s1 + $0x728] sm:$0xf]  ;;  %v4389_v60 = vld [vmem:[%s6684_s1 + $0x734] sm:$0xf0]  ;;  %v3601_v2 = vor.u32 %v4357_v57, %v3600_v56  ;;  %v3026_v46 = vld [vmem:[%s6684_s1 + $0x1b8] sm:$0xf0] }
  0xae   :  { %1902 = vmatpush.bf16.msrb.mxu0 %v3409_v6  ;;  %v3328_v62 = vld [vmem:[%s6684_s1 + $0x408] sm:$0xf]  ;;  %v4289_v63 = vld [vmem:[%s6684_s1 + $0x414] sm:$0xf0]  ;;  %v3729_v6 = vor.u32 %v4389_v60, %v3728_v59  ;;  %v3282_v51 = vld [vmem:[%s6684_s1 + $0x3b8] sm:$0xf0]  ;;  %v3029_v53 = vor.u32 %v4211_v42, %v3026_v46 }
  0xaf   :  { %1916 = vmatpush.bf16.msrb.mxu1 %v3537_v7  ;;  %v3456_v3 = vld [vmem:[%s6684_s1 + $0x508] sm:$0xf]  ;;  %v4321_v4 = vld [vmem:[%s6684_s1 + $0x514] sm:$0xf0]  ;;  %v3329_v14 = vor.u32 %v4289_v63, %v3328_v62  ;;  %v4175_v55 = vld [vmem:[%s6684_s1 + $0x8c] sm:$0xf] }
  0xb0   :  { %1930 = vmatpush.bf16.msrb.mxu2 %v3665_v8  ;;  %v3584_v5 = vld [vmem:[%s6684_s1 + $0x608] sm:$0xf]  ;;  %v4353_v7 = vld [vmem:[%s6684_s1 + $0x614] sm:$0xf0]  ;;  %v3457_v19 = vor.u32 %v4321_v4, %v3456_v3  ;;  %v2882_v56 = vld [vmem:[%s6684_s1 + $0x98] sm:$0xf0]  ;;  %v5879_v3 = vpop.f32.mrf.mxu0 }
  0xb1   :  { %1944 = vmatpush.bf16.msrb.mxu3 %v3793_v13  ;;  %v3712_v8 = vld [vmem:[%s6684_s1 + $0x708] sm:$0xf]  ;;  %v4385_v9 = vld [vmem:[%s6684_s1 + $0x714] sm:$0xf0]  ;;  %v4219_v13 = vld [vmem:[%s6684_s1 + $0x1ec] sm:$0xf] }
  0xb2   :  { %1903 = vmatpush.bf16.msrb.mxu0 %v3393_v20  ;;  %v3585_v20 = vor.u32 %v4353_v7, %v3584_v5  ;;  %v3713_v23 = vor.u32 %v4385_v9, %v3712_v8  ;;  %v3061_v25 = vor.u32 %v4219_v13, %v3058_v15  ;;  %v4207_v57 = vld [vmem:[%s6684_s1 + $0x18c] sm:$0xf]  ;;  %v3010_v60 = vld [vmem:[%s6684_s1 + $0x198] sm:$0xf0]  ;;  %v5890_v9 = vpop.f32.mrf.mxu1 }
  0xb3   :  { %1917 = vmatpush.bf16.msrb.mxu1 %v3521_v21  ;;  %v4283_v21 = vld [vmem:[%s6684_s1 + $0x3ec] sm:$0xf]  ;;  %v3138_v62 = vld [vmem:[%s6684_s1 + $0x298] sm:$0xf0]  ;;  %v3013_v4 = vor.u32 %v4207_v57, %v3010_v60 }
  0xb4   :  { %1931 = vmatpush.bf16.msrb.mxu2 %v3649_v22  ;;  %v3314_v22 = vld [vmem:[%s6684_s1 + $0x3f8] sm:$0xf0]  ;;  %v4271_v63 = vld [vmem:[%s6684_s1 + $0x38c] sm:$0xf] }
  0xb5   :  { %1945 = vmatpush.bf16.msrb.mxu3 %v3777_v26  ;;  %v3189_v26 = vor.u32 %v4251_v16, %v3186_v18  ;;  %v3317_v30 = vor.u32 %v4283_v21, %v3314_v22  ;;  %v2866_v7 = vld [vmem:[%s6684_s1 + $0x78] sm:$0xf0]  ;;  %v4203_v8 = vld [vmem:[%s6684_s1 + $0x16c] sm:$0xf] }
  0xb6   :  { %1904 = vmatpush.bf16.msrb.mxu0 %v3377_v32  ;;  %v4247_v32 = vld [vmem:[%s6684_s1 + $0x2cc] sm:$0xf]  ;;  %v2994_v12 = vld [vmem:[%s6684_s1 + $0x178] sm:$0xf0] }
  0xb7   :  { %1918 = vmatpush.bf16.msrb.mxu1 %v3505_v33  ;;  %v3170_v33 = vld [vmem:[%s6684_s1 + $0x2d8] sm:$0xf0]  ;;  %v4235_v13 = vld [vmem:[%s6684_s1 + $0x26c] sm:$0xf] }
  0xb8   :  { %1932 = vmatpush.bf16.msrb.mxu2 %v3633_v34  ;;  %v4279_v34 = vld [vmem:[%s6684_s1 + $0x3cc] sm:$0xf]  ;;  %v3250_v16 = vld [vmem:[%s6684_s1 + $0x378] sm:$0xf0] }
  0xb9   :  { %1946 = vmatpush.bf16.msrb.mxu3 %v3761_v38  ;;  %v3173_v38 = vor.u32 %v4247_v32, %v3170_v33  ;;  %v3301_v45 = vor.u32 %v4279_v34, %v3298_v35  ;;  %v4267_v15 = vld [vmem:[%s6684_s1 + $0x36c] sm:$0xf]  ;;  %v2850_v22 = vld [vmem:[%s6684_s1 + $0x58] sm:$0xf0]  ;;  %v5933_v32 = vpop.f32.mrf.mxu3 }
  0xba   :  { %1905 = vmatpush.bf16.msrb.mxu0 %v3361_v48  ;;  %v4243_v48 = vld [vmem:[%s6684_s1 + $0x2ac] sm:$0xf]  ;;  %v3106_v27 = vld [vmem:[%s6684_s1 + $0x258] sm:$0xf0] }
  0xbb   :  { %1919 = vmatpush.bf16.msrb.mxu1 %v3489_v49  ;;  %v3154_v49 = vld [vmem:[%s6684_s1 + $0x2b8] sm:$0xf0]  ;;  %v4167_v21 = vld [vmem:[%s6684_s1 + $0x4c] sm:$0xf] }
  0xbc   :  { %1933 = vmatpush.bf16.msrb.mxu2 %v3617_v50  ;;  %v4275_v50 = vld [vmem:[%s6684_s1 + $0x3ac] sm:$0xf]  ;;  %v3234_v29 = vld [vmem:[%s6684_s1 + $0x358] sm:$0xf0]  ;;  %v2853_v31 = vor.u32 %v4167_v21, %v2850_v22 }
  0xbd   :  { %1947 = vmatpush.bf16.msrb.mxu3 %v3745_v54  ;;  %v3157_v54 = vor.u32 %v4243_v48, %v3154_v49  ;;  %v3285_v59 = vor.u32 %v4275_v50, %v3282_v51  ;;  %v4263_v28 = vld [vmem:[%s6684_s1 + $0x34c] sm:$0xf]  ;;  %v2962_v40 = vld [vmem:[%s6684_s1 + $0x138] sm:$0xf0]  ;;  %v5961_v49 = vpop.f32.mrf.mxu1 }
  0xbe   :  { %1906 = vmatpush.bf16.msrb.mxu0 %v3345_v61  ;;  %v4239_v61 = vld [vmem:[%s6684_s1 + $0x28c] sm:$0xf]  ;;  %v3090_v42 = vld [vmem:[%s6684_s1 + $0x238] sm:$0xf0] }
  0xbf   :  { %1920 = vmatpush.bf16.msrb.mxu1 %v3473_v0  ;;  %v3266_v0 = vld [vmem:[%s6684_s1 + $0x398] sm:$0xf0]  ;;  %v3141_v5 = vor.u32 %v4239_v61, %v3138_v62  ;;  %v4163_v35 = vld [vmem:[%s6684_s1 + $0x2c] sm:$0xf] }
  0xc0   :  { %1934 = vmatpush.bf16.msrb.mxu2 %v3601_v2  ;;  %v2885_v2 = vor.u32 %v4175_v55, %v2882_v56  ;;  %v3269_v11 = vor.u32 %v4271_v63, %v3266_v0  ;;  %v4227_v41 = vld [vmem:[%s6684_s1 + $0x22c] sm:$0xf]  ;;  %v3218_v48 = vld [vmem:[%s6684_s1 + $0x338] sm:$0xf0] }
  0xc1   :  { %1948 = vmatpush.bf16.msrb.mxu3 %v3729_v6  ;;  %v4171_v6 = vld [vmem:[%s6684_s1 + $0x6c] sm:$0xf]  ;;  %v2946_v56 = vld [vmem:[%s6684_s1 + $0x118] sm:$0xf0] }
  0xc2   :  { %1907 = vmatpush.bf16.msrb.mxu0 %v3329_v14  ;;  %v3122_v14 = vld [vmem:[%s6684_s1 + $0x278] sm:$0xf0]  ;;  %v2869_v18 = vor.u32 %v4171_v6, %v2866_v7  ;;  %v4259_v46 = vld [vmem:[%s6684_s1 + $0x32c] sm:$0xf] }
  0xc3   :  { %1921 = vmatpush.bf16.msrb.mxu1 %v3457_v19  ;;  %v2997_v19 = vor.u32 %v4203_v8, %v2994_v12  ;;  %v4159_v51 = vld [vmem:[%s6684_s1 + $0xc] sm:$0xf]  ;;  %v3074_v60 = vld [vmem:[%s6684_s1 + $0x218] sm:$0xf0] }
  0xc4   :  { %1935 = vmatpush.bf16.msrb.mxu2 %v3585_v20  ;;  %v3125_v20 = vor.u32 %v4235_v13, %v3122_v14  ;;  %v4191_v55 = vld [vmem:[%s6684_s1 + $0x10c] sm:$0xf]  ;;  %v3202_v62 = vld [vmem:[%s6684_s1 + $0x318] sm:$0xf0] }
  0xc5   :  { %1949 = vmatpush.bf16.msrb.mxu3 %v3713_v23  ;;  %1908 = vmatmul.bf16.vlgmr.msrb.gmra.mxu0 %v5020_v39  ;;  %v4199_v23 = vld [vmem:[%s6684_s1 + $0x14c] sm:$0xf]  ;;  %v3442_v0 = vld [vmem:[%s6684_s1 + $0x4f8] sm:$0xf0]  ;;  %v2949_v8 = vor.u32 %v4191_v55, %v2946_v56 }
  0xc6   :  { %1956 = vmatpush.bf16.msra.mxu0 %v2933_v24  ;;  %1922 = vmatmul.bf16.vlgmr.msrb.gmra.mxu1 %v5033_v44  ;;  %v3253_v24 = vor.u32 %v4267_v15, %v3250_v16  ;;  %v4223_v57 = vld [vmem:[%s6684_s1 + $0x20c] sm:$0xf]  ;;  %v3698_v7 = vld [vmem:[%s6684_s1 + $0x6f8] sm:$0xf0] }
  0xc7   :  { %1970 = vmatpush.bf16.msra.mxu1 %v3061_v25  ;;  %1936 = vmatmul.bf16.vlgmr.msrb.gmra.mxu2 %v5031_v43  ;;  %v2978_v25 = vld [vmem:[%s6684_s1 + $0x158] sm:$0xf0]  ;;  %v4255_v61 = vld [vmem:[%s6684_s1 + $0x30c] sm:$0xf] }
  0xc8   :  { %1984 = vmatpush.bf16.msra.mxu2 %v3189_v26  ;;  %1950 = vmatmul.bf16.vlgmr.msrb.gmra.mxu3 %v5041_v47  ;;  %v4231_v26 = vld [vmem:[%s6684_s1 + $0x24c] sm:$0xf]  ;;  %v2981_v33 = vor.u32 %v4199_v23, %v2978_v25  ;;  %v3826_v13 = vld [vmem:[%s6684_s1 + $0x7f8] sm:$0xf0]  ;;  %v3205_v15 = vor.u32 %v4255_v61, %v3202_v62 }
  0xc9   :  { %1998 = vmatpush.bf16.msra.mxu3 %v3317_v30  ;;  %v5931_v30 = vpop.f32.mrf.mxu2  ;;  %v3109_v34 = vor.u32 %v4231_v26, %v3106_v27  ;;  %v4315_v63 = vld [vmem:[%s6684_s1 + $0x4ec] sm:$0xf]  ;;  %v3426_v22 = vld [vmem:[%s6684_s1 + $0x4d8] sm:$0xf0] }
  0xca   :  { %1957 = vmatpush.bf16.msra.mxu0 %v2917_v36  ;;  %v2834_v36 = vld [vmem:[%s6684_s1 + $0x38] sm:$0xf0]  ;;  %v4379_v6 = vld [vmem:[%s6684_s1 + $0x6ec] sm:$0xf]  ;;  %v3445_v16 = vor.u32 %v4315_v63, %v3442_v0 }
  0xcb   :  { %1971 = vmatpush.bf16.msra.mxu1 %v3045_v37  ;;  %v4195_v37 = vld [vmem:[%s6684_s1 + $0x12c] sm:$0xf]  ;;  %v2837_v50 = vor.u32 %v4163_v35, %v2834_v36  ;;  %v3554_v25 = vld [vmem:[%s6684_s1 + $0x5d8] sm:$0xf0] }
  0xcc   :  { %1985 = vmatpush.bf16.msra.mxu2 %v3173_v38  ;;  %v3237_v38 = vor.u32 %v4263_v28, %v3234_v29  ;;  %v4411_v12 = vld [vmem:[%s6684_s1 + $0x7ec] sm:$0xf]  ;;  %v3682_v27 = vld [vmem:[%s6684_s1 + $0x6d8] sm:$0xf0] }
  0xcd   :  { %1999 = vmatpush.bf16.msra.mxu3 %v3301_v45  ;;  %v5953_v45 = vpop.f32.mrf.mxu0  ;;  %v4311_v21 = vld [vmem:[%s6684_s1 + $0x4cc] sm:$0xf]  ;;  %v3394_v55 = vld [vmem:[%s6684_s1 + $0x498] sm:$0xf0] }
  0xce   :  { %1958 = vmatpush.bf16.msra.mxu0 %v2901_v52  ;;  %v2818_v52 = vld [vmem:[%s6684_s1 + $0x18] sm:$0xf0]  ;;  %v4343_v23 = vld [vmem:[%s6684_s1 + $0x5cc] sm:$0xf] }
  0xcf   :  { %1972 = vmatpush.bf16.msra.mxu1 %v3029_v53  ;;  %v2965_v53 = vor.u32 %v4195_v37, %v2962_v40  ;;  %v4375_v26 = vld [vmem:[%s6684_s1 + $0x6cc] sm:$0xf]  ;;  %v3557_v35 = vor.u32 %v4343_v23, %v3554_v25  ;;  %v3522_v56 = vld [vmem:[%s6684_s1 + $0x598] sm:$0xf0] }
  0xd0   :  { %1986 = vmatpush.bf16.msra.mxu2 %v3157_v54  ;;  %v3093_v54 = vor.u32 %v4227_v41, %v3090_v42  ;;  %v4407_v29 = vld [vmem:[%s6684_s1 + $0x7cc] sm:$0xf]  ;;  %v3685_v36 = vor.u32 %v4375_v26, %v3682_v27  ;;  %v3538_v42 = vld [vmem:[%s6684_s1 + $0x5b8] sm:$0xf0] }
  0xd1   :  { %2000 = vmatpush.bf16.msra.mxu3 %v3285_v59  ;;  %v3221_v59 = vor.u32 %v4259_v46, %v3218_v48  ;;  %v6011_v14 = vpop.f32.mrf.mxu2  ;;  %v4307_v37 = vld [vmem:[%s6684_s1 + $0x4ac] sm:$0xf]  ;;  %v3666_v48 = vld [vmem:[%s6684_s1 + $0x6b8] sm:$0xf0] }
  0xd2   :  { %1959 = vmatpush.bf16.msra.mxu0 %v2885_v2  ;;  %v4347_v2 = vld [vmem:[%s6684_s1 + $0x5ec] sm:$0xf]  ;;  %v3778_v62 = vld [vmem:[%s6684_s1 + $0x798] sm:$0xf0] }
  0xd3   :  { %1973 = vmatpush.bf16.msra.mxu1 %v3013_v4  ;;  %v2821_v4 = vor.u32 %v4159_v51, %v2818_v52  ;;  %v4339_v40 = vld [vmem:[%s6684_s1 + $0x5ac] sm:$0xf]  ;;  %v3362_v25 = vld [vmem:[%s6684_s1 + $0x458] sm:$0xf0] }
  0xd4   :  { %1987 = vmatpush.bf16.msra.mxu2 %v3141_v5  ;;  %v3570_v5 = vld [vmem:[%s6684_s1 + $0x5f8] sm:$0xf0]  ;;  %v4371_v46 = vld [vmem:[%s6684_s1 + $0x6ac] sm:$0xf]  ;;  %v3541_v52 = vor.u32 %v4339_v40, %v3538_v42 }
  0xd5   :  { %2001 = vmatpush.bf16.msra.mxu3 %v3269_v11  ;;  %v3077_v11 = vor.u32 %v4223_v57, %v3074_v60  ;;  %v6033_v28 = vpop.f32.mrf.mxu0  ;;  %v4367_v57 = vld [vmem:[%s6684_s1 + $0x68c] sm:$0xf] }
  0xd6   :  { %1960 = vmatpush.bf16.msra.mxu0 %v2869_v18  ;;  %v6013_v18 = vpop.f32.mrf.mxu3  ;;  %v4399_v61 = vld [vmem:[%s6684_s1 + $0x78c] sm:$0xf] }
  0xd7   :  { %1974 = vmatpush.bf16.msra.mxu1 %v2997_v19  ;;  %v3573_v19 = vor.u32 %v4347_v2, %v3570_v5  ;;  %v4299_v5 = vld [vmem:[%s6684_s1 + $0x46c] sm:$0xf] }
  0xd8   :  { %1988 = vmatpush.bf16.msra.mxu2 %v3125_v20  ;;  %v3701_v20 = vor.u32 %v4379_v6, %v3698_v7  ;;  %v3378_v6 = vld [vmem:[%s6684_s1 + $0x478] sm:$0xf0]  ;;  %v4331_v7 = vld [vmem:[%s6684_s1 + $0x56c] sm:$0xf] }
  0xd9   :  { %2002 = vmatpush.bf16.msra.mxu3 %v3253_v24  ;;  %v3829_v24 = vor.u32 %v4411_v12, %v3826_v13  ;;  %v3506_v12 = vld [vmem:[%s6684_s1 + $0x578] sm:$0xf0]  ;;  %v4363_v13 = vld [vmem:[%s6684_s1 + $0x66c] sm:$0xf] }
  0xda   :  { %1961 = vmatpush.bf16.msra.mxu0 %v2853_v31  ;;  %v3810_v31 = vld [vmem:[%s6684_s1 + $0x7d8] sm:$0xf0]  ;;  %v4327_v26 = vld [vmem:[%s6684_s1 + $0x54c] sm:$0xf] }
  0xdb   :  { %1975 = vmatpush.bf16.msra.mxu1 %v2981_v33  ;;  %v6041_v33 = vpop.f32.mrf.mxu1  ;;  %v3813_v41 = vor.u32 %v4407_v29, %v3810_v31  ;;  %v3490_v29 = vld [vmem:[%s6684_s1 + $0x558] sm:$0xf0]  ;;  %v4359_v31 = vld [vmem:[%s6684_s1 + $0x64c] sm:$0xf] }
  0xdc   :  { %1989 = vmatpush.bf16.msra.mxu2 %v3109_v34  ;;  %v3429_v34 = vor.u32 %v4311_v21, %v3426_v22  ;;  %v3381_v21 = vor.u32 %v4299_v5, %v3378_v6  ;;  %v3509_v22 = vor.u32 %v4331_v7, %v3506_v12  ;;  %v3493_v42 = vor.u32 %v4327_v26, %v3490_v29  ;;  %v3458_v5 = vld [vmem:[%s6684_s1 + $0x518] sm:$0xf0] }
  0xdd   :  { %2003 = vmatpush.bf16.msra.mxu3 %v3237_v38  ;;  %v3410_v38 = vld [vmem:[%s6684_s1 + $0x4b8] sm:$0xf0]  ;;  %v6099_v0 = vpop.f32.mrf.mxu0 }
  0xde   :  { %1962 = vmatpush.bf16.msra.mxu0 %v2837_v50  ;;  %v4403_v50 = vld [vmem:[%s6684_s1 + $0x7ac] sm:$0xf]  ;;  %v3413_v51 = vor.u32 %v4307_v37, %v3410_v38  ;;  %v6091_v60 = vpop.f32.mrf.mxu3  ;;  %v3586_v12 = vld [vmem:[%s6684_s1 + $0x618] sm:$0xf0] }
  0xdf   :  { %1976 = vmatpush.bf16.msra.mxu1 %v2965_v53  ;;  %v3669_v53 = vor.u32 %v4371_v46, %v3666_v48 }
  0xe0   :  { %1990 = vmatpush.bf16.msra.mxu2 %v3093_v54  ;;  %v4303_v54 = vld [vmem:[%s6684_s1 + $0x48c] sm:$0xf] }
  0xe1   :  { %2004 = vmatpush.bf16.msra.mxu3 %v3221_v59  ;;  %v3650_v59 = vld [vmem:[%s6684_s1 + $0x698] sm:$0xf0]  ;;  %v3397_v63 = vor.u32 %v4303_v54, %v3394_v55  ;;  %v4355_v54 = vld [vmem:[%s6684_s1 + $0x62c] sm:$0xf] }
  0xe2   :  { %1963 = vmatpush.bf16.msra.mxu0 %v2821_v4  ;;  %v3653_v4 = vor.u32 %v4367_v57, %v3650_v59  ;;  %v3602_v55 = vld [vmem:[%s6684_s1 + $0x638] sm:$0xf0] }
  0xe3   :  { %1977 = vmatpush.bf16.msra.mxu1 %v2949_v8  ;;  %v6110_v8 = vpop.f32.mrf.mxu1 }
  0xe4   :  { %1991 = vmatpush.bf16.msra.mxu2 %v3077_v11  ;;  %v3781_v11 = vor.u32 %v4399_v61, %v3778_v62  ;;  %v4287_v61 = vld [vmem:[%s6684_s1 + $0x40c] sm:$0xf] }
  0xe5   :  { %2005 = vmatpush.bf16.msra.mxu3 %v3205_v15  ;;  %1964 = vmatmul.bf16.vlgmr.msra.gmra.mxu0 %v4798_v58  ;;  %v4335_v58 = vld [vmem:[%s6684_s1 + $0x58c] sm:$0xf]  ;;  %v3634_v15 = vld [vmem:[%s6684_s1 + $0x678] sm:$0xf0]  ;;  %v1741_v48 = vpop.f32.mrf.mxu0 }
  0xe6   :  { %2012 = vmatpush.bf16.msrb.mxu0 %v3445_v16  ;;  %1978 = vmatmul.bf16.vlgmr.msra.gmra.mxu1 %v4834_v10  ;;  %v3525_v2 = vor.u32 %v4335_v58, %v3522_v56  ;;  %v4395_v16 = vld [vmem:[%s6684_s1 + $0x76c] sm:$0xf]  ;;  %v3637_v23 = vor.u32 %v4363_v13, %v3634_v15  ;;  %v3730_v56 = vld [vmem:[%s6684_s1 + $0x738] sm:$0xf0] }
  0xe7   :  { %2026 = vmatpush.bf16.msrb.mxu1 %v3573_v19  ;;  %1992 = vmatmul.bf16.vlgmr.msra.gmra.mxu2 %v4812_v1  ;;  %v3794_v1 = vld [vmem:[%s6684_s1 + $0x7b8] sm:$0xf0]  ;;  %v4383_v13 = vld [vmem:[%s6684_s1 + $0x70c] sm:$0xf] }
  0xe8   :  { %2040 = vmatpush.bf16.msrb.mxu2 %v3701_v20  ;;  %2006 = vmatmul.bf16.vlgmr.msra.gmra.mxu3 %v4848_v17  ;;  %v6080_v17 = vpop.f32.mrf.mxu2  ;;  %v3797_v10 = vor.u32 %v4403_v50, %v3794_v1  ;;  %v3762_v19 = vld [vmem:[%s6684_s1 + $0x778] sm:$0xf0]  ;;  %v6130_v20 = vld [vmem:[%s6686_s2] sm:$0xf]  ;;  %v4291_v50 = vld [vmem:[%s6684_s1 + $0x42c] sm:$0xf] }
  0xe9   :  { %2054 = vmatpush.bf16.msrb.mxu3 %v3829_v24  ;;  %v4295_v24 = vld [vmem:[%s6684_s1 + $0x44c] sm:$0xf]  ;;  %v3765_v27 = vor.u32 %v4395_v16, %v3762_v19  ;;  %v292_v37 = vperm.slane %v6130_v20, 0  ;;  %v3346_v1 = vld [vmem:[%s6684_s1 + $0x438] sm:$0xf0]  ;;  %v293_v57 = vperm.slane %v6130_v20, 1 }
  0xea   :  { %2013 = vmatpush.bf16.msrb.mxu0 %v3429_v34  ;;  %v3618_v34 = vld [vmem:[%s6684_s1 + $0x658] sm:$0xf0]  ;;  %v3365_v40 = vor.u32 %v4295_v24, %v3362_v25  ;;  %v3349_v59 = vor.u32 %v4291_v50, %v3346_v1  ;;  %v4429_v16 = vld [vmem:[%s6687_s3 + $0x74] sm:$0xf0] }
  0xeb   :  { %2027 = vmatpush.bf16.msrb.mxu1 %v3557_v35  ;;  %v4391_v35 = vld [vmem:[%s6684_s1 + $0x74c] sm:$0xf]  ;;  %v3621_v46 = vor.u32 %v4359_v31, %v3618_v34  ;;  %v1755_v58 = vpop.f32.mrf.mxu1  ;;  %v1630_v6 = vadd.f32 %v5879_v3, %v292_v37  ;;  %v3714_v15 = vld [vmem:[%s6684_s1 + $0x718] sm:$0xf0]  ;;  %v3888_v3 = vld [vmem:[%s6687_s3 + $0x70] sm:$0xf]  ;;  %v1632_v19 = vadd.f32 %v5953_v45, %v292_v37  ;;  %v1742_v25 = vadd.f32 %v1741_v48, %v293_v57 }
  0xec   :  { %2041 = vmatpush.bf16.msrb.mxu2 %v3685_v36  ;;  %v3746_v36 = vld [vmem:[%s6684_s1 + $0x758] sm:$0xf0]  ;;  %v3717_v45 = vor.u32 %v4383_v13, %v3714_v15  ;;  %v3889_v34 = vor.u32 %v4429_v16, %v3888_v3  ;;  %v3880_v37 = vld [vmem:[%s6687_s3 + $0x60] sm:$0xf]  ;;  %v4421_v13 = vld [vmem:[%s6687_s3 + $0x34] sm:$0xf0] }
  0xed   :  { %2055 = vmatpush.bf16.msrb.mxu3 %v3813_v41  ;;  %v6159_v41 = vpop.f32.mrf.mxu3  ;;  %v1644_v31 = vadd.f32 %v5890_v9, %v1630_v6  ;;  %v4443_v9 = vld [vmem:[%s6687_s3 + $0xe4] sm:$0xf0]  ;;  %v1646_v48 = vadd.f32 %v5961_v49, %v1632_v19  ;;  %v1756_v50 = vadd.f32 %v1755_v58, %v1742_v25  ;;  %v4425_v49 = vld [vmem:[%s6687_s3 + $0x54] sm:$0xf0] }
  0xee   :  { %2014 = vmatpush.bf16.msrb.mxu0 %v3413_v51  ;;  %v4323_v51 = vld [vmem:[%s6684_s1 + $0x52c] sm:$0xf] }
  0xef   :  { %2028 = vmatpush.bf16.msrb.mxu1 %v3541_v52  ;;  %v3749_v52 = vor.u32 %v4391_v35, %v3746_v36  ;;  %v1743_v36 = vpop.f32.mrf.mxu0  ;;  %v1658_v1 = vadd.f32 %v5931_v30, %v1644_v31  ;;  %v3936_v30 = vld [vmem:[%s6687_s3 + $0xd0] sm:$0xf] }
  0xf0   :  { %2042 = vmatpush.bf16.msrb.mxu2 %v3669_v53  ;;  %v6157_v38 = vpop.f32.mrf.mxu2  ;;  %v3474_v53 = vld [vmem:[%s6684_s1 + $0x538] sm:$0xf0] }
  0xf1   :  { %2056 = vmatpush.bf16.msrb.mxu3 %v3797_v10  ;;  %v4387_v10 = vld [vmem:[%s6684_s1 + $0x72c] sm:$0xf]  ;;  %v3477_v62 = vor.u32 %v4323_v51, %v3474_v53 }
  0xf2   :  { %2015 = vmatpush.bf16.msrb.mxu0 %v3397_v63  ;;  %v3605_v63 = vor.u32 %v4355_v54, %v3602_v55  ;;  %v3733_v7 = vor.u32 %v4387_v10, %v3730_v56  ;;  %v3872_v54 = vld [vmem:[%s6687_s3 + $0x50] sm:$0xf]  ;;  %v1660_v55 = vadd.f32 %v6011_v14, %v1646_v48  ;;  %v1672_v10 = vadd.f32 %v5933_v32, %v1658_v1  ;;  %v4423_v14 = vld [vmem:[%s6687_s3 + $0x44] sm:$0xf0] }
  0xf3   :  { %2029 = vmatpush.bf16.msrb.mxu1 %v3525_v2  ;;  %v3330_v2 = vld [vmem:[%s6684_s1 + $0x418] sm:$0xf0]  ;;  %v3873_v56 = vor.u32 %v4425_v49, %v3872_v54  ;;  %v4439_v32 = vld [vmem:[%s6687_s3 + $0xc4] sm:$0xf0]  ;;  %v3904_v48 = vld [vmem:[%s6687_s3 + $0x90] sm:$0xf] }
  0xf4   :  { %2043 = vmatpush.bf16.msrb.mxu2 %v3653_v4  ;;  %v4319_v4 = vld [vmem:[%s6684_s1 + $0x50c] sm:$0xf]  ;;  %v4459_v1 = vld [vmem:[%s6687_s3 + $0x164] sm:$0xf0]  ;;  %v3832_v49 = vld [vmem:[%s6687_s3] sm:$0xf] }
  0xf5   :  { %2057 = vmatpush.bf16.msrb.mxu3 %v3781_v11  ;;  %v4351_v11 = vld [vmem:[%s6684_s1 + $0x60c] sm:$0xf]  ;;  %v3461_v26 = vor.u32 %v4319_v4, %v3458_v5  ;;  %v1783_v29 = vpop.f32.mrf.mxu3  ;;  %v1686_v4 = vadd.f32 %v6033_v28, %v1672_v10  ;;  %v4437_v28 = vld [vmem:[%s6687_s3 + $0xb4] sm:$0xf0]  ;;  %v3896_v10 = vld [vmem:[%s6687_s3 + $0x80] sm:$0xf] }
  0xf6   :  { %2016 = vmatpush.bf16.msrb.mxu0 %v3381_v21  ;;  %v3333_v21 = vor.u32 %v4287_v61, %v3330_v2  ;;  %v3864_v61 = vld [vmem:[%s6687_s3 + $0x40] sm:$0xf] }
  0xf7   :  { %2030 = vmatpush.bf16.msrb.mxu1 %v3509_v22  ;;  %v3952_v22 = vld [vmem:[%s6687_s3 + $0xf0] sm:$0xf]  ;;  %v3865_v5 = vor.u32 %v4423_v14, %v3864_v61  ;;  %v1700_v16 = vadd.f32 %v6041_v33, %v1686_v4  ;;  %v4435_v33 = vld [vmem:[%s6687_s3 + $0xa4] sm:$0xf0] }
  0xf8   :  { %2044 = vmatpush.bf16.msrb.mxu2 %v3637_v23  ;;  %v4445_v23 = vld [vmem:[%s6687_s3 + $0xf4] sm:$0xf0]  ;;  %v1769_v24 = vpop.f32.mrf.mxu2 }
  0xf9   :  { %2058 = vmatpush.bf16.msrb.mxu3 %v3765_v27  ;;  %v3589_v27 = vor.u32 %v4351_v11, %v3586_v12  ;;  %v3953_v35 = vor.u32 %v4445_v23, %v3952_v22  ;;  %v1770_v58 = vadd.f32 %v1769_v24, %v1756_v50  ;;  %v3856_v12 = vld [vmem:[%s6687_s3 + $0x30] sm:$0xf]  ;;  %v3848_v23 = vld [vmem:[%s6687_s3 + $0x20] sm:$0xf]  ;;  %v4419_v24 = vld [vmem:[%s6687_s3 + $0x24] sm:$0xf0] }
  0xfa   :  { %2017 = vmatpush.bf16.msrb.mxu0 %v3365_v40  ;;  %v4427_v40 = vld [vmem:[%s6687_s3 + $0x64] sm:$0xf0]  ;;  %v3857_v19 = vor.u32 %v4421_v13, %v3856_v12  ;;  %v4008_v50 = vld [vmem:[%s6687_s3 + $0x160] sm:$0xf]  ;;  %v3882_v13 = vld [vmem:[%s6687_s3 + $0x68] sm:$0xf0] }
  0xfb   :  { %2031 = vmatpush.bf16.msrb.mxu1 %v3493_v42  ;;  %v3944_v42 = vld [vmem:[%s6687_s3 + $0xe0] sm:$0xf]  ;;  %v3881_v51 = vor.u32 %v4427_v40, %v3880_v37  ;;  %v3849_v37 = vor.u32 %v4419_v24, %v3848_v23 }
  0xfc   :  { %2045 = vmatpush.bf16.msrb.mxu2 %v3621_v46  ;;  %v1757_v46 = vpop.f32.mrf.mxu1  ;;  %v3945_v53 = vor.u32 %v4443_v9, %v3944_v42 }
  0xfd   :  { %2059 = vmatpush.bf16.msrb.mxu3 %v3749_v52  ;;  %v1744_v52 = vadd.f32 %v1743_v36, %v293_v57  ;;  %v1714_v36 = vadd.f32 %v6080_v17, %v1700_v16  ;;  %v4442_v16 = vld [vmem:[%s6687_s3 + $0xe4] sm:$0xf] }
  0xfe   :  { %2018 = vmatpush.bf16.msrb.mxu0 %v3349_v59  ;;  %v1785_v59 = vpop.f32.mrf.mxu3 }
  0xff   :  { %2032 = vmatpush.bf16.msrb.mxu1 %v3477_v62  ;;  %v1674_v62 = vadd.f32 %v6013_v18, %v1660_v55  ;;  %v3920_v18 = vld [vmem:[%s6687_s3 + $0xb0] sm:$0xf] }
 0x100   :  { %2046 = vmatpush.bf16.msrb.mxu2 %v3605_v63  ;;  %v1784_v63 = vadd.f32 %v1783_v29, %v1770_v58  ;;  %v3921_v22 = vor.u32 %v4437_v28, %v3920_v18  ;;  %v3992_v18 = vld [vmem:[%s6687_s3 + $0x140] sm:$0xf]  ;;  %v4455_v28 = vld [vmem:[%s6687_s3 + $0x144] sm:$0xf0] }
 0x101   :  { %2060 = vmatpush.bf16.msrb.mxu3 %v3733_v7  ;;  %v1688_v15 = vadd.f32 %v6099_v0, %v1674_v62  ;;  %v3912_v0 = vld [vmem:[%s6687_s3 + $0xa0] sm:$0xf] }
 0x102   :  { %2019 = vmatpush.bf16.msrb.mxu0 %v3333_v21  ;;  %v1797_v2 = vpop.f32.mrf.mxu0  ;;  %v3913_v9 = vor.u32 %v4435_v33, %v3912_v0  ;;  %v3984_v0 = vld [vmem:[%s6687_s3 + $0x130] sm:$0xf] }
 0x103   :  { %2033 = vmatpush.bf16.msrb.mxu1 %v3461_v26  ;;  %v1798_v3 = vadd.f32 %v1797_v2, %v1784_v63  ;;  %v4016_v26 = vld [vmem:[%s6687_s3 + $0x170] sm:$0xf]  ;;  %v1702_v29 = vadd.f32 %v6110_v8, %v1688_v15  ;;  %v4417_v8 = vld [vmem:[%s6687_s3 + $0x14] sm:$0xf0] }
 0x104   :  { %2047 = vmatpush.bf16.msrb.mxu2 %v3589_v27  ;;  %v1811_v6 = vpop.f32.mrf.mxu1  ;;  %v4461_v27 = vld [vmem:[%s6687_s3 + $0x174] sm:$0xf0] }
 0x105   :  { %2061 = vmatpush.bf16.msrb.mxu3 %v3717_v45  ;;  %2020 = vmatmul.bf16.vlgmr.msrb.gmra.mxu0 %v5020_v39  ;;  %v4441_v39 = vld [vmem:[%s6687_s3 + $0xd4] sm:$0xf0]  ;;  %v1812_v31 = vadd.f32 %v1811_v6, %v1798_v3  ;;  %v1716_v40 = vadd.f32 %v6157_v38, %v1702_v29  ;;  %v4440_v29 = vld [vmem:[%s6687_s3 + $0xd4] sm:$0xf] }
 0x106   :  { %2470 = vmatpush.bf16.msra.mxu0 %v3889_v34  ;;  %2034 = vmatmul.bf16.vlgmr.msrb.gmra.mxu1 %v5033_v44  ;;  %v1771_v44 = vpop.f32.mrf.mxu2  ;;  %v3937_v57 = vor.u32 %v4441_v39, %v3936_v30  ;;  %v4433_v38 = vld [vmem:[%s6687_s3 + $0x94] sm:$0xf0]  ;;  %v4415_v30 = vld [vmem:[%s6687_s3 + $0x4] sm:$0xf0] }
 0x107   :  { %2484 = vmatpush.bf16.msra.mxu1 %v3953_v35  ;;  %2048 = vmatmul.bf16.vlgmr.msrb.gmra.mxu2 %v5031_v43  ;;  %v1758_v43 = vadd.f32 %v1757_v46, %v1744_v52  ;;  %v4017_v35 = vor.u32 %v4461_v27, %v4016_v26  ;;  %v3840_v46 = vld [vmem:[%s6687_s3 + $0x10] sm:$0xf]  ;;  %v4009_v52 = vor.u32 %v4459_v1, %v4008_v50  ;;  %v4424_v26 = vld [vmem:[%s6687_s3 + $0x54] sm:$0xf]  ;;  %v3874_v27 = vld [vmem:[%s6687_s3 + $0x58] sm:$0xf0] }
 0x108   :  { %2062 = vmatmul.bf16.vlgmr.msrb.gmra.mxu3 %v5041_v47  ;;  %v3928_v47 = vld [vmem:[%s6687_s3 + $0xc0] sm:$0xf]  ;;  %v3841_v54 = vor.u32 %v4417_v8, %v3840_v46  ;;  %v1730_v39 = vadd.f32 %v6159_v41, %v1716_v40  ;;  %v3905_v58 = vor.u32 %v4433_v38, %v3904_v48  ;;  %v3890_v41 = vld [vmem:[%s6687_s3 + $0x78] sm:$0xf0]  ;;  %v3833_v2 = vor.u32 %v4415_v30, %v3832_v49  ;;  %v4422_v40 = vld [vmem:[%s6687_s3 + $0x44] sm:$0xf] }
 0x109   :  { %v1772_v7 = vadd.f32 %v1771_v44, %v1758_v43  ;;  %v3929_v11 = vor.u32 %v4439_v32, %v3928_v47  ;;  %2498 = vmatpush.bf16.msra.mxu2 %v4017_v35  ;;  %v4000_v43 = vld [vmem:[%s6687_s3 + $0x150] sm:$0xf]  ;;  %v4444_v47 = vld [vmem:[%s6687_s3 + $0xf4] sm:$0xf]  ;;  %v3954_v32 = vld [vmem:[%s6687_s3 + $0xf8] sm:$0xf0] }
 0x10a   :  { %2471 = vmatpush.bf16.msra.mxu0 %v3881_v51  ;;  %v1799_v45 = vpop.f32.mrf.mxu0  ;;  %v2072_v4 = vmax.f32 %v1730_v39, 0.0  ;;  %v3957_v12 = vor.u32 %v4444_v47, %v3954_v32  ;;  %v4451_v35 = vld [vmem:[%s6687_s3 + $0x124] sm:$0xf0]  ;;  %v4438_v46 = vld [vmem:[%s6687_s3 + $0xc4] sm:$0xf] }
 0x10b   :  { %2485 = vmatpush.bf16.msra.mxu1 %v3945_v53  ;;  %v1786_v21 = vadd.f32 %v1785_v59, %v1772_v7  ;;  %v1839_v34 = vpop.f32.mrf.mxu3  ;;  %v1728_v53 = vadd.f32 %v6091_v60, %v1714_v36  ;;  %v4431_v60 = vld [vmem:[%s6687_s3 + $0x84] sm:$0xf0]  ;;  %v3877_v36 = vor.u32 %v4424_v26, %v3874_v27  ;;  %v3930_v8 = vld [vmem:[%s6687_s3 + $0xc8] sm:$0xf0]  ;;  %v3858_v50 = vld [vmem:[%s6687_s3 + $0x38] sm:$0xf0] }
 0x10c   :  { %v1813_v17 = vpop.f32.mrf.mxu1  ;;  %v3897_v6 = vor.u32 %v4431_v60, %v3896_v10  ;;  %v3933_v38 = vor.u32 %v4438_v46, %v3930_v8  ;;  %v3968_v1 = vld [vmem:[%s6687_s3 + $0x110] sm:$0xf]  ;;  %v4418_v30 = vld [vmem:[%s6687_s3 + $0x24] sm:$0xf]  ;;  %v3850_v39 = vld [vmem:[%s6687_s3 + $0x28] sm:$0xf0] }
 0x10d   :  { %v1800_v42 = vadd.f32 %v1799_v45, %v1786_v21  ;;  %2499 = vmatpush.bf16.msra.mxu2 %v4009_v52  ;;  %v2068_v63 = vmax.f32 %v1728_v53, 0.0  ;;  %v3993_v21 = vor.u32 %v4455_v28, %v3992_v18  ;;  %v3938_v45 = vld [vmem:[%s6687_s3 + $0xd8] sm:$0xf0]  ;;  %v4436_v52 = vld [vmem:[%s6687_s3 + $0xb4] sm:$0xf] }
 0x10e   :  { %2472 = vmatpush.bf16.msra.mxu0 %v3873_v56  ;;  %v1825_v25 = vpop.f32.mrf.mxu2  ;;  %v4428_v56 = vld [vmem:[%s6687_s3 + $0x74] sm:$0xf]  ;;  %v3922_v53 = vld [vmem:[%s6687_s3 + $0xb8] sm:$0xf0]  ;;  %v3960_v10 = vld [vmem:[%s6687_s3 + $0x100] sm:$0xf] }
 0x10f   :  { %2486 = vmatpush.bf16.msra.mxu1 %v3937_v57  ;;  %v1826_v51 = vadd.f32 %v1825_v25, %v1812_v31  ;;  %v1814_v55 = vadd.f32 %v1813_v17, %v1800_v42  ;;  %v4457_v57 = vld [vmem:[%s6687_s3 + $0x154] sm:$0xf0]  ;;  %v3893_v7 = vor.u32 %v4428_v56, %v3890_v41  ;;  %v3866_v42 = vld [vmem:[%s6687_s3 + $0x48] sm:$0xf0]  ;;  %v4420_v17 = vld [vmem:[%s6687_s3 + $0x34] sm:$0xf] }
 0x110   :  { %v4001_v62 = vor.u32 %v4457_v57, %v4000_v43  ;;  %v4453_v25 = vld [vmem:[%s6687_s3 + $0x134] sm:$0xf0]  ;;  %v3869_v48 = vor.u32 %v4422_v40, %v3866_v42  ;;  %v3861_v49 = vor.u32 %v4420_v17, %v3858_v50  ;;  %v4447_v60 = vld [vmem:[%s6687_s3 + $0x104] sm:$0xf0]  ;;  %v3914_v56 = vld [vmem:[%s6687_s3 + $0xa8] sm:$0xf0] }
 0x111   :  { %v1840_v59 = vadd.f32 %v1839_v34, %v1826_v51  ;;  %v3985_v31 = vor.u32 %v4453_v25, %v3984_v0  ;;  %v3976_v34 = vld [vmem:[%s6687_s3 + $0x120] sm:$0xf]  ;;  %v4449_v51 = vld [vmem:[%s6687_s3 + $0x114] sm:$0xf0]  ;;  %v4460_v41 = vld [vmem:[%s6687_s3 + $0x174] sm:$0xf] }
 0x112   :  { %2473 = vmatpush.bf16.msra.mxu0 %v3865_v5  ;;  %2500 = vmatpush.bf16.msra.mxu2 %v4001_v62  ;;  %v4018_v43 = vld [vmem:[%s6687_s3 + $0x178] sm:$0xf0]  ;;  %v4432_v32 = vld [vmem:[%s6687_s3 + $0x94] sm:$0xf]  ;;  %v3834_v18 = vld [vmem:[%s6687_s3 + $0x8] sm:$0xf0] }
 0x113   :  { %2487 = vmatpush.bf16.msra.mxu1 %v3929_v11  ;;  %v1841_v14 = vpop.f32.mrf.mxu3  ;;  %v4426_v11 = vld [vmem:[%s6687_s3 + $0x64] sm:$0xf]  ;;  %v2069_v15 = vmax.f32 %v1840_v59, 0.0  ;;  %v4021_v57 = vor.u32 %v4460_v41, %v4018_v43  ;;  %v3853_v59 = vor.u32 %v4418_v30, %v3850_v39  ;;  %v3842_v47 = vld [vmem:[%s6687_s3 + $0x18] sm:$0xf0] }
 0x114   :  { %v3885_v24 = vor.u32 %v4426_v11, %v3882_v13  ;;  %v4414_v13 = vld [vmem:[%s6687_s3 + $0x4] sm:$0xf]  ;;  %v3994_v27 = vld [vmem:[%s6687_s3 + $0x148] sm:$0xf0]  ;;  %v3970_v17 = vld [vmem:[%s6687_s3 + $0x118] sm:$0xf0] }
 0x115   :  { %v4430_v28 = vld [vmem:[%s6687_s3 + $0x84] sm:$0xf]  ;;  %v3978_v42 = vld [vmem:[%s6687_s3 + $0x128] sm:$0xf0]  ;;  %v4477_v30 = vld [vmem:[%s6687_s3 + $0x1f4] sm:$0xf0] }
 0x116   :  { %2474 = vmatpush.bf16.msra.mxu0 %v3857_v19  ;;  %v1827_v44 = vpop.f32.mrf.mxu2  ;;  %v3946_v19 = vld [vmem:[%s6687_s3 + $0xe8] sm:$0xf0]  ;;  %2501 = vmatpush.bf16.msra.mxu2 %v3993_v21  ;;  %v3837_v21 = vor.u32 %v4414_v13, %v3834_v18  ;;  %v4454_v26 = vld [vmem:[%s6687_s3 + $0x144] sm:$0xf] }
 0x117   :  { %2488 = vmatpush.bf16.msra.mxu1 %v3921_v22  ;;  %v1828_v61 = vadd.f32 %v1827_v44, %v1814_v55  ;;  %v6374_v22 = vpack.c.bf16 %v2072_v4, %v2068_v63  ;;  %v3949_v33 = vor.u32 %v4442_v16, %v3946_v19  ;;  %v3925_v55 = vor.u32 %v4436_v52, %v3922_v53  ;;  %v3906_v63 = vld [vmem:[%s6687_s3 + $0x98] sm:$0xf0]  ;;  %v4010_v4 = vld [vmem:[%s6687_s3 + $0x168] sm:$0xf0]  ;;  %v4450_v40 = vld [vmem:[%s6687_s3 + $0x124] sm:$0xf] }
 0x118   :  { %v3961_v44 = vor.u32 %v4447_v60, %v3960_v10  ;;  %v4002_v16 = vld [vmem:[%s6687_s3 + $0x158] sm:$0xf0]  ;;  %v3981_v8 = vor.u32 %v4450_v40, %v3978_v42  ;;  %v4474_v40 = vld [vmem:[%s6687_s3 + $0x1e4] sm:$0xf]  ;;  %v4074_v42 = vld [vmem:[%s6687_s3 + $0x1e8] sm:$0xf0] }
 0x119   :  { %v1842_v5 = vadd.f32 %v1841_v14, %v1828_v61  ;;  %v4416_v14 = vld [vmem:[%s6687_s3 + $0x14] sm:$0xf] }
 0x11a   :  { %2475 = vmatpush.bf16.msra.mxu0 %v3849_v37  ;;  %v3941_v37 = vor.u32 %v4440_v29, %v3938_v45  ;;  %2502 = vmatpush.bf16.msra.mxu2 %v3985_v31  ;;  %v3845_v11 = vor.u32 %v4416_v14, %v3842_v47  ;;  %v3997_v29 = vor.u32 %v4454_v26, %v3994_v27  ;;  %v4473_v47 = vld [vmem:[%s6687_s3 + $0x1d4] sm:$0xf0]  ;;  %v4032_v26 = vld [vmem:[%s6687_s3 + $0x190] sm:$0xf] }
 0x11b   :  { %2489 = vmatpush.bf16.msra.mxu1 %v3913_v9  ;;  %v2073_v3 = vmax.f32 %v1842_v5, 0.0  ;;  %v3977_v9 = vor.u32 %v4451_v35, %v3976_v34  ;;  %v4452_v35 = vld [vmem:[%s6687_s3 + $0x134] sm:$0xf]  ;;  %v4465_v27 = vld [vmem:[%s6687_s3 + $0x194] sm:$0xf0] }
 0x11d   :  { %v6376_v23 = vpack.c.bf16 %v2073_v3, %v2069_v15  ;;  %v3898_v15 = vld [vmem:[%s6687_s3 + $0x88] sm:$0xf0]  ;;  %v4456_v3 = vld [vmem:[%s6687_s3 + $0x154] sm:$0xf] }
 0x11e   :  { %2476 = vmatpush.bf16.msra.mxu0 %v3841_v54  ;;  %2503 = vmatpush.bf16.msra.mxu2 %v3977_v9  ;;  %v3969_v54 = vor.u32 %v4449_v51, %v3968_v1  ;;  %v4005_v19 = vor.u32 %v4456_v3, %v4002_v16 }
 0x11f   :  { %2490 = vmatpush.bf16.msra.mxu1 %v3905_v58  ;;  %v4434_v58 = vld [vmem:[%s6687_s3 + $0xa4] sm:$0xf] }
 0x120   :  { %v3917_v61 = vor.u32 %v4434_v58, %v3914_v56 }
 0x122   :  { %2477 = vmatpush.bf16.msra.mxu0 %v3833_v2  ;;  %2504 = vmatpush.bf16.msra.mxu2 %v3969_v54  ;;  %v1853_v62 = vpop.f32.mrf.mxu0  ;;  %v4458_v2 = vld [vmem:[%s6687_s3 + $0x164] sm:$0xf] }
 0x123   :  { %2491 = vmatpush.bf16.msra.mxu1 %v3897_v6  ;;  %v1867_v5 = vpop.f32.mrf.mxu1  ;;  %v4013_v6 = vor.u32 %v4458_v2, %v4010_v4  ;;  %v4446_v54 = vld [vmem:[%s6687_s3 + $0x104] sm:$0xf]  ;;  %v4056_v4 = vld [vmem:[%s6687_s3 + $0x1c0] sm:$0xf] }
 0x125   :  { %2478 = vmatmul.bf16.vlgmr.msra.gmra.mxu0 %v6374_v22 }
 0x126   :  { %2526 = vmatpush.bf16.msrb.mxu0 %v3893_v7  ;;  %2492 = vmatmul.bf16.vlgmr.msra.gmra.mxu1 %v6376_v23  ;;  %v294_v7 = vperm.slane %v6130_v20, 2 }
 0x127   :  { %2540 = vmatpush.bf16.msrb.mxu1 %v3957_v12  ;;  %2505 = vmatpush.bf16.msra.mxu2 %v3961_v44  ;;  %v3909_v12 = vor.u32 %v4432_v32, %v3906_v63 }
 0x128   :  { %v1854_v25 = vadd.f32 %v1853_v62, %v294_v7 }
 0x12a   :  { %2527 = vmatpush.bf16.msrb.mxu0 %v3885_v24  ;;  %v3901_v24 = vor.u32 %v4430_v28, %v3898_v15  ;;  %v1881_v0 = vpop.f32.mrf.mxu2  ;;  %v1855_v31 = vpop.f32.mrf.mxu0  ;;  %v1868_v34 = vadd.f32 %v1867_v5, %v1854_v25  ;;  %v4471_v5 = vld [vmem:[%s6687_s3 + $0x1c4] sm:$0xf0]  ;;  %v4048_v28 = vld [vmem:[%s6687_s3 + $0x1b0] sm:$0xf]  ;;  %v4469_v15 = vld [vmem:[%s6687_s3 + $0x1b4] sm:$0xf0] }
 0x12b   :  { %2541 = vmatpush.bf16.msrb.mxu1 %v3949_v33  ;;  %2554 = vmatpush.bf16.msrb.mxu2 %v4021_v57  ;;  %v1895_v33 = vpop.f32.mrf.mxu3  ;;  %v1869_v45 = vpop.f32.mrf.mxu1  ;;  %v1856_v9 = vadd.f32 %v1855_v31, %v294_v7  ;;  %v4072_v57 = vld [vmem:[%s6687_s3 + $0x1e0] sm:$0xf]  ;;  %v4049_v16 = vor.u32 %v4469_v15, %v4048_v28 }
 0x12c   :  { %v1882_v46 = vadd.f32 %v1881_v0, %v1868_v34  ;;  %v4467_v0 = vld [vmem:[%s6687_s3 + $0x1a4] sm:$0xf0]  ;;  %v4024_v31 = vld [vmem:[%s6687_s3 + $0x180] sm:$0xf] }
 0x12e   :  { %2528 = vmatpush.bf16.msrb.mxu0 %v3877_v36  ;;  %v3986_v36 = vld [vmem:[%s6687_s3 + $0x138] sm:$0xf0]  ;;  %v1896_v1 = vadd.f32 %v1895_v33, %v1882_v46 }
 0x12f   :  { %2542 = vmatpush.bf16.msrb.mxu1 %v3941_v37  ;;  %2555 = vmatpush.bf16.msrb.mxu2 %v4013_v6  ;;  %v3989_v37 = vor.u32 %v4452_v35, %v3986_v36  ;;  %v4476_v35 = vld [vmem:[%s6687_s3 + $0x1f4] sm:$0xf]  ;;  %v4082_v36 = vld [vmem:[%s6687_s3 + $0x1f8] sm:$0xf0] }
 0x132   :  { %2529 = vmatpush.bf16.msrb.mxu0 %v3869_v48  ;;  %v1883_v48 = vpop.f32.mrf.mxu2 }
 0x133   :  { %2543 = vmatpush.bf16.msrb.mxu1 %v3933_v38  ;;  %2556 = vmatpush.bf16.msrb.mxu2 %v4005_v19  ;;  %v1870_v38 = vadd.f32 %v1869_v45, %v1856_v9  ;;  %v1897_v50 = vpop.f32.mrf.mxu3  ;;  %v4463_v45 = vld [vmem:[%s6687_s3 + $0x184] sm:$0xf0]  ;;  %v4077_v9 = vor.u32 %v4474_v40, %v4074_v42  ;;  %v4492_v40 = vld [vmem:[%s6689_s5 + $0x70] sm:$0xff] }
 0x134   :  { %v4025_v34 = vor.u32 %v4463_v45, %v4024_v31  ;;  %v4484_v31 = vld [vmem:[%s6689_s5 + $0x30] sm:$0xff]  ;;  %v4483_v45 = vld [vmem:[%s6689_s5 + $0x28] sm:$0xff] }
 0x135   :  { %v1884_v39 = vadd.f32 %v1883_v48, %v1870_v38  ;;  %v4066_v48 = vld [vmem:[%s6687_s3 + $0x1d8] sm:$0xf0]  ;;  %v4470_v38 = vld [vmem:[%s6687_s3 + $0x1c4] sm:$0xf]  ;;  %v4479_v42 = vld [vmem:[%s6689_s5 + $0x8] sm:$0xff] }
 0x136   :  { %2530 = vmatpush.bf16.msrb.mxu0 %v3861_v49  ;;  %v3962_v49 = vld [vmem:[%s6687_s3 + $0x108] sm:$0xf0] }
 0x137   :  { %2544 = vmatpush.bf16.msrb.mxu1 %v3925_v55  ;;  %2557 = vmatpush.bf16.msrb.mxu2 %v3997_v29  ;;  %v3965_v10 = vor.u32 %v4446_v54, %v3962_v49  ;;  %v1898_v60 = vadd.f32 %v1897_v50, %v1884_v39  ;;  %v4033_v29 = vor.u32 %v4465_v27, %v4032_v26  ;;  %v4058_v50 = vld [vmem:[%s6687_s3 + $0x1c8] sm:$0xf0]  ;;  %v4050_v54 = vld [vmem:[%s6687_s3 + $0x1b8] sm:$0xf0] }
 0x13a   :  { %2531 = vmatpush.bf16.msrb.mxu0 %v3853_v59  ;;  %v4475_v59 = vld [vmem:[%s6687_s3 + $0x1e4] sm:$0xf0] }
 0x13b   :  { %2545 = vmatpush.bf16.msrb.mxu1 %v3917_v61  ;;  %2558 = vmatpush.bf16.msrb.mxu2 %v3989_v37  ;;  %v4064_v61 = vld [vmem:[%s6687_s3 + $0x1d0] sm:$0xf]  ;;  %v4073_v14 = vor.u32 %v4475_v59, %v4072_v57  ;;  %v4085_v37 = vor.u32 %v4476_v35, %v4082_v36  ;;  %v4481_v35 = vld [vmem:[%s6689_s5 + $0x18] sm:$0xff] }
 0x13c   :  { %v4065_v63 = vor.u32 %v4473_v47, %v4064_v61  ;;  %v4493_v36 = vld [vmem:[%s6689_s5 + $0x78] sm:$0xff] }
 0x13e   :  { %2532 = vmatpush.bf16.msrb.mxu0 %v3845_v11  ;;  %v4057_v11 = vor.u32 %v4471_v5, %v4056_v4 }
 0x13f   :  { %2546 = vmatpush.bf16.msrb.mxu1 %v3909_v12  ;;  %2559 = vmatpush.bf16.msrb.mxu2 %v3981_v8  ;;  %v4472_v8 = vld [vmem:[%s6687_s3 + $0x1d4] sm:$0xf] }
 0x142   :  { %2533 = vmatpush.bf16.msrb.mxu0 %v3837_v21  ;;  %v1909_v51 = vpop.f32.mrf.mxu0 }
 0x143   :  { %2547 = vmatpush.bf16.msrb.mxu1 %v3901_v24  ;;  %v1923_v53 = vpop.f32.mrf.mxu1  ;;  %v1910_v58 = vadd.f32 %v1909_v51, %v1896_v1  ;;  %v4040_v24 = vld [vmem:[%s6687_s3 + $0x1a0] sm:$0xf]  ;;  %v295_v1 = vperm.slane %v6130_v20, 3  ;;  %v4061_v51 = vor.u32 %v4470_v38, %v4058_v50  ;;  %v4042_v20 = vld [vmem:[%s6687_s3 + $0x1a8] sm:$0xf0] }
 0x144   :  { %v4041_v33 = vor.u32 %v4467_v0, %v4040_v24  ;;  %v4487_v50 = vld [vmem:[%s6689_s5 + $0x48] sm:$0xff] }
 0x145   :  { %2534 = vmatmul.bf16.vlgmr.msrb.gmra.mxu0 %v6374_v22  ;;  %v4448_v22 = vld [vmem:[%s6687_s3 + $0x114] sm:$0xf]  ;;  %v1924_v44 = vadd.f32 %v1923_v53, %v1910_v58 }
 0x146   :  { %2548 = vmatmul.bf16.vlgmr.msrb.gmra.mxu1 %v6376_v23  ;;  %v3973_v52 = vor.u32 %v4448_v22, %v3970_v17  ;;  %v4080_v23 = vld [vmem:[%s6687_s3 + $0x1f0] sm:$0xf]  ;;  %v4069_v22 = vor.u32 %v4472_v8, %v4066_v48  ;;  %v4468_v53 = vld [vmem:[%s6687_s3 + $0x1b4] sm:$0xf]  ;;  %v4490_v8 = vld [vmem:[%s6689_s5 + $0x60] sm:$0xff] }
 0x147   :  { %v4081_v55 = vor.u32 %v4477_v30, %v4080_v23  ;;  %v4053_v39 = vor.u32 %v4468_v53, %v4050_v54  ;;  %2734 = vmatpush.bf16.msra.mxu1 %v4493_v36  ;;  %v4489_v48 = vld [vmem:[%s6689_s5 + $0x58] sm:$0xff] }
 0x148   :  { %2560 = vmatpush.bf16.msrb.mxu2 %v3973_v52 }
 0x149   :  { %2512 = vmatpush.bf16.msra.mxu3 %v4081_v55  ;;  %v4466_v55 = vld [vmem:[%s6687_s3 + $0x1a4] sm:$0xf] }
 0x14a   :  { %v1937_v56 = vpop.f32.mrf.mxu2  ;;  %v1911_v41 = vpop.f32.mrf.mxu0  ;;  %v4045_v58 = vor.u32 %v4466_v55, %v4042_v20 }
 0x14b   :  { %v1951_v43 = vpop.f32.mrf.mxu3  ;;  %v1912_v32 = vadd.f32 %v1911_v41, %v1898_v60  ;;  %v1925_v62 = vpop.f32.mrf.mxu1  ;;  %v1938_v2 = vadd.f32 %v1937_v56, %v1924_v44  ;;  %v4464_v41 = vld [vmem:[%s6687_s3 + $0x194] sm:$0xf]  ;;  %2735 = vmatpush.bf16.msra.mxu1 %v4492_v40 }
 0x14c   :  { %2561 = vmatpush.bf16.msrb.mxu2 %v3965_v10 }
 0x14d   :  { %2513 = vmatpush.bf16.msra.mxu3 %v4073_v14  ;;  %v1926_v6 = vadd.f32 %v1925_v62, %v1912_v32  ;;  %v1952_v12 = vadd.f32 %v1951_v43, %v1938_v2  ;;  %v4034_v43 = vld [vmem:[%s6687_s3 + $0x198] sm:$0xf0]  ;;  %v4462_v32 = vld [vmem:[%s6687_s3 + $0x184] sm:$0xf]  ;;  %v4026_v62 = vld [vmem:[%s6687_s3 + $0x188] sm:$0xf0] }
 0x14e   :  { %v4037_v47 = vor.u32 %v4464_v41, %v4034_v43 }
 0x14f   :  { %v2070_v19 = vmax.f32 %v1952_v12, 0.0 }
 0x151   :  { %2514 = vmatpush.bf16.msra.mxu3 %v4065_v63  ;;  %v4029_v63 = vor.u32 %v4462_v32, %v4026_v62 }
 0x152   :  { %v1939_v7 = vpop.f32.mrf.mxu2 }
 0x153   :  { %v1940_v13 = vadd.f32 %v1939_v7, %v1926_v6  ;;  %v1953_v18 = vpop.f32.mrf.mxu3 }
 0x155   :  { %v1954_v3 = vadd.f32 %v1953_v18, %v1940_v13  ;;  %2515 = vmatpush.bf16.msra.mxu3 %v4057_v11 }
 0x157   :  { %v2074_v21 = vmax.f32 %v1954_v3, 0.0 }
 0x159   :  { %v2078_v25 = vpack.c.bf16 %v2074_v21, %v2070_v19  ;;  %2516 = vmatpush.bf16.msra.mxu3 %v4049_v16 }
 0x15b   :  { %2506 = vmatmul.bf16.vlgmr.msra.gmra.mxu2 %v2078_v25 }
 0x15d   :  { %2517 = vmatpush.bf16.msra.mxu3 %v4041_v33 }
 0x161   :  { %2518 = vmatpush.bf16.msra.mxu3 %v4033_v29  ;;  %v4485_v29 = vld [vmem:[%s6689_s5 + $0x38] sm:$0xff] }
 0x162   :  { %v1965_v46 = vpop.f32.mrf.mxu0  ;;  %2720 = vmatpush.bf16.msra.mxu0 %v4485_v29 }
 0x163   :  { %v1979_v17 = vpop.f32.mrf.mxu1  ;;  %v1966_v49 = vadd.f32 %v1965_v46, %v295_v1  ;;  %v4478_v46 = vld [vmem:[%s6689_s5] sm:$0xff] }
 0x165   :  { %2519 = vmatpush.bf16.msra.mxu3 %v4025_v34  ;;  %v1980_v60 = vadd.f32 %v1979_v17, %v1966_v49  ;;  %v4482_v34 = vld [vmem:[%s6689_s5 + $0x20] sm:$0xff]  ;;  %v4488_v17 = vld [vmem:[%s6689_s5 + $0x50] sm:$0xff] }
 0x166   :  { %2721 = vmatpush.bf16.msra.mxu0 %v4484_v31 }
 0x169   :  { %2568 = vmatpush.bf16.msrb.mxu3 %v4085_v37  ;;  %v4480_v37 = vld [vmem:[%s6689_s5 + $0x10] sm:$0xff] }
 0x16a   :  { %v1993_v52 = vpop.f32.mrf.mxu2  ;;  %v1967_v30 = vpop.f32.mrf.mxu0  ;;  %2722 = vmatpush.bf16.msra.mxu0 %v4483_v45 }
 0x16b   :  { %2562 = vmatmul.bf16.vlgmr.msrb.gmra.mxu2 %v2078_v25  ;;  %v2007_v23 = vpop.f32.mrf.mxu3  ;;  %v1981_v10 = vpop.f32.mrf.mxu1  ;;  %v1968_v56 = vadd.f32 %v1967_v30, %v295_v1  ;;  %v1994_v57 = vadd.f32 %v1993_v52, %v1980_v60  ;;  %v2144_v1 = vld [vmem:[%s6690_s4] sm:$0x3] }
 0x16c   :  { %v2146_v52 = vperm.slane %v2144_v1, 0 }
 0x16d   :  { %2569 = vmatpush.bf16.msrb.mxu3 %v4077_v9  ;;  %v1982_v59 = vadd.f32 %v1981_v10, %v1968_v56  ;;  %v2008_v4 = vadd.f32 %v2007_v23, %v1994_v57  ;;  %v4491_v9 = vld [vmem:[%s6689_s5 + $0x68] sm:$0xff]  ;;  %v4486_v23 = vld [vmem:[%s6689_s5 + $0x40] sm:$0xff] }
 0x16e   :  { %2723 = vmatpush.bf16.msra.mxu0 %v4482_v34  ;;  %2736 = vmatpush.bf16.msra.mxu1 %v4491_v9 }
 0x171   :  { %2570 = vmatpush.bf16.msrb.mxu3 %v4069_v22 }
 0x172   :  { %v1995_v44 = vpop.f32.mrf.mxu2  ;;  %2724 = vmatpush.bf16.msra.mxu0 %v4481_v35  ;;  %2737 = vmatpush.bf16.msra.mxu1 %v4490_v8 }
 0x173   :  { %v2009_v61 = vpop.f32.mrf.mxu3  ;;  %v1996_v5 = vadd.f32 %v1995_v44, %v1982_v59 }
 0x175   :  { %2571 = vmatpush.bf16.msrb.mxu3 %v4061_v51  ;;  %v2010_v11 = vadd.f32 %v2009_v61, %v1996_v5  ;;  %v2147_v61 = vperm.slane %v2144_v1, 1 }
 0x176   :  { %2725 = vmatpush.bf16.msra.mxu0 %v4480_v37  ;;  %2738 = vmatpush.bf16.msra.mxu1 %v4489_v48 }
 0x179   :  { %2572 = vmatpush.bf16.msrb.mxu3 %v4053_v39 }
 0x17a   :  { %2726 = vmatpush.bf16.msra.mxu0 %v4479_v42  ;;  %2739 = vmatpush.bf16.msra.mxu1 %v4488_v17 }
 0x17d   :  { %2573 = vmatpush.bf16.msrb.mxu3 %v4045_v58 }
 0x17e   :  { %2727 = vmatpush.bf16.msra.mxu0 %v4478_v46  ;;  %2740 = vmatpush.bf16.msra.mxu1 %v4487_v50 }
 0x181   :  { %2574 = vmatpush.bf16.msrb.mxu3 %v4037_v47 }
 0x182   :  { %v2021_v14 = vpop.f32.mrf.mxu0  ;;  %2741 = vmatpush.bf16.msra.mxu1 %v4486_v23 }
 0x183   :  { %v2035_v2 = vpop.f32.mrf.mxu1  ;;  %v2022_v6 = vadd.f32 %v2021_v14, %v2008_v4 }
 0x185   :  { %2575 = vmatpush.bf16.msrb.mxu3 %v4029_v63  ;;  %v2036_v18 = vadd.f32 %v2035_v2, %v2022_v6 }
 0x18a   :  { %v2049_v7 = vpop.f32.mrf.mxu2  ;;  %v2023_v13 = vpop.f32.mrf.mxu0 }
 0x18b   :  { %v2063_v12 = vpop.f32.mrf.mxu3  ;;  %v2024_v28 = vadd.f32 %v2023_v13, %v2010_v11  ;;  %v2050_v15 = vadd.f32 %v2049_v7, %v2036_v18  ;;  %v2037_v3 = vpop.f32.mrf.mxu1 }
 0x18d   :  { %v2038_v16 = vadd.f32 %v2037_v3, %v2024_v28  ;;  %v2064_v21 = vadd.f32 %v2063_v12, %v2050_v15 }
 0x18f   :  { %v2071_v33 = vmax.f32 %v2064_v21, 0.0 }
 0x192   :  { %v2051_v19 = vpop.f32.mrf.mxu2 }
 0x193   :  { %v2052_v24 = vadd.f32 %v2051_v19, %v2038_v16  ;;  %v2065_v0 = vpop.f32.mrf.mxu3 }
 0x195   :  { %v2066_v25 = vadd.f32 %v2065_v0, %v2052_v24  ;;  %v4494_v24 = vld [vmem:[%s6688_s6] ss:$0 sm:$0xff] }
 0x197   :  { %v2075_v26 = vmax.f32 %v2066_v25, 0.0 }
 0x199   :  { %v2079_v27 = vpack.c.bf16 %v2075_v26, %v2071_v33 }
 0x19b   :  { %2520 = vmatmul.bf16.vlgmr.msra.gmra.mxu3 %v2079_v27 }
 0x1a2   :  { %v2479_v22 = vpop.f32.mrf.mxu0 }
 0x1a3   :  { %v2493_v51 = vpop.f32.mrf.mxu1  ;;  %v2480_v54 = vadd.f32 %v2479_v22, %v2146_v52 }
 0x1a5   :  { %v2494_v20 = vadd.f32 %v2493_v51, %v2480_v54 }
 0x1aa   :  { %v2481_v53 = vpop.f32.mrf.mxu0 }
 0x1ab   :  { %2576 = vmatmul.bf16.vlgmr.msrb.gmra.mxu3 %v2079_v27  ;;  %v2482_v39 = vadd.f32 %v2481_v53, %v2146_v52  ;;  %v2495_v55 = vpop.f32.mrf.mxu1 }
 0x1ad   :  { %v2496_v10 = vadd.f32 %v2495_v55, %v2482_v39 }
 0x1c2   :  { %v2535_v58 = vpop.f32.mrf.mxu0 }
 0x1c3   :  { %v2549_v57 = vpop.f32.mrf.mxu1  ;;  %v2536_v63 = vadd.f32 %v2535_v58, %v2147_v61 }
 0x1c5   :  { %v2550_v5 = vadd.f32 %v2549_v57, %v2536_v63 }
 0x1ca   :  { %v2537_v62 = vpop.f32.mrf.mxu0 }
 0x1cb   :  { %v2538_v4 = vadd.f32 %v2537_v62, %v2147_v61  ;;  %v2551_v6 = vpop.f32.mrf.mxu1 }
 0x1cd   :  { %v2552_v11 = vadd.f32 %v2551_v6, %v2538_v4 }
 0x1de   :  { %v2507_v38 = vpop.f32.mrf.mxu2 }
 0x1df   :  { %v2508_v60 = vadd.f32 %v2507_v38, %v2494_v20 }
 0x1e6   :  { %v2509_v49 = vpop.f32.mrf.mxu2 }
 0x1e7   :  { %v2510_v56 = vadd.f32 %v2509_v49, %v2496_v10 }
 0x1ee   :  { %v2563_v59 = vpop.f32.mrf.mxu2 }
 0x1ef   :  { %v2564_v12 = vadd.f32 %v2563_v59, %v2550_v5 }
 0x1f6   :  { %v2565_v7 = vpop.f32.mrf.mxu2 }
 0x1f7   :  { %v2566_v13 = vadd.f32 %v2565_v7, %v2552_v11 }
 0x21e   :  { %v2521_v30 = vpop.f32.mrf.mxu3 }
 0x21f   :  { %v2522_v44 = vadd.f32 %v2521_v30, %v2508_v60 }
 0x221   :  { %v2582_v14 = vmax.f32 %v2522_v44, 0.0 }
 0x226   :  { %v2523_v41 = vpop.f32.mrf.mxu3 }
 0x227   :  { %v2524_v43 = vadd.f32 %v2523_v41, %v2510_v56 }
 0x229   :  { %v2584_v47 = vmax.f32 %v2524_v43, 0.0 }
 0x22b   :  { %v2586_v32 = vpack.c.bf16 %v2584_v47, %v2582_v14 }
 0x22d   :  { %2728 = vmatmul.bf16.vlgmr.msra.gmra.mxu0 %v2586_v32 }
 0x22e   :  { %v2577_v2 = vpop.f32.mrf.mxu3 }
 0x22f   :  { %v2578_v18 = vadd.f32 %v2577_v2, %v2564_v12 }
 0x231   :  { %v2583_v3 = vmax.f32 %v2578_v18, 0.0 }
 0x236   :  { %v2579_v28 = vpop.f32.mrf.mxu3 }
 0x237   :  { %v2580_v15 = vadd.f32 %v2579_v28, %v2566_v13 }
 0x239   :  { %v2585_v16 = vmax.f32 %v2580_v15, 0.0 }
 0x23b   :  { %v2587_v19 = vpack.c.bf16 %v2585_v16, %v2583_v3 }
 0x23d   :  { %2742 = vmatmul.bf16.vlgmr.msra.gmra.mxu1 %v2587_v19 }
 0x2aa   :  { %v2729_v21 = vpop.f32.mrf.mxu0 }
 0x2ab   :  { %v2730_v0 = vadd.f32 %v4494_v24, %v2729_v21 }
 0x2b2   :  { %v2731_v26 = vpop.f32.mrf.mxu0 }
 0x2b3   :  { %v2732_v27 = vadd.f32 %v4494_v24, %v2731_v26 }
 0x2ba   :  { %v2743_v25 = vpop.f32.mrf.mxu1 }
 0x2bb   :  { %v2744_v33 = vadd.f32 %v2743_v25, %v2730_v0 }
 0x2bd   :  { %2748 = vmax.xlane.f32.xlu0 %v2744_v33 }
 0x2c2   :  { %v2745_v29 = vpop.f32.mrf.mxu1 }
 0x2c3   :  { %v2746_v31 = vadd.f32 %v2745_v29, %v2732_v27 }
 0x2c5   :  { %2750 = vmax.xlane.f32.xlu0 %v2746_v31 }
 0x330   :  { %v2749_v45 = vpop.xlane.xlu0 %2748 }
 0x331   :  { %v2752_v34 = vsub.f32 %v2744_v33, %v2749_v45 }
 0x333   :  { %v2754_v35 = vmul.f32 1.442695, %v2752_v34 }
 0x335   :  { %4495 = vpow2.f32 %v2754_v35 }
 0x338   :  { %v2751_v36 = vpop.xlane.xlu0 %2750 }
 0x339   :  { %v2753_v37 = vsub.f32 %v2746_v31, %v2751_v36 }
 0x33b   :  { %v4496_v40 = vpop.eup %4495  ;;  %v2756_v42 = vmul.f32 1.442695, %v2753_v37 }
 0x33c   :  { %2758 = vadd.xlane.f32.xlu1 %v4496_v40 }
 0x33d   :  { %4497 = vpow2.f32 %v2756_v42 }
 0x343   :  { %v4498_v9 = vpop.eup %4497 }
 0x344   :  { %2760 = vadd.xlane.f32.xlu1 %v4498_v9 }
 0x3af   :  { %v2759_v46 = vpop.xlane.xlu1 %2758 }
 0x3b0   :  { %4499 = vlog2.f32 %v2759_v46 }
 0x3b6   :  { %v4500_v8 = vpop.eup %4499 }
 0x3b7   :  { %v2763_v48 = vmul.f32 0.6931472, %v4500_v8  ;;  %v2761_v22 = vpop.xlane.xlu1 %2760 }
 0x3b8   :  { %4501 = vlog2.f32 %v2761_v22 }
 0x3b9   :  { %v2766_v17 = vsub.f32 %v2752_v34, %v2763_v48 }
 0x3bb   :  { %2768 = vst [vmem:[%s6691_s7] sm:$0xff] %v2766_v17 }
 0x3be   :  { %v4502_v38 = vpop.eup %4501 }
 0x3bf   :  { %v2765_v50 = vmul.f32 0.6931472, %v4502_v38 }
 0x3c1   :  { %v2767_v1 = vsub.f32 %v2753_v37, %v2765_v50 }
 0x3c3   :  { %2769 = vst [vmem:[%s6691_s7 + $0x8] sm:$0xff] %v2767_v1 }

</bundles_post_ra>
